<compile_context>
chip_gen: v7x
topology: tpu7x:2x2x1
jax: 0.10.0
libtpu: 0.0.40
codegen_flags: <defaults>
</compile_context>

<pallas_src>
import functools
import math

import jax
import jax.numpy as jnp
from jax.experimental import pallas as pl
from jax.experimental.pallas import tpu as pltpu

B = 2            # batch
S = 8            # max_seq_length / sequence length
H = 32           # hidden_size
NH = 4           # num_attention_heads
DH = H // NH     # attention_head_size
INTER = 64       # intermediate_size
NUM_LAYERS = 2   # num_hidden_layers
NUM_DP = 4       # graph relation vocabulary size
EPS = 1e-12      # layer_norm_eps
KPROJ = 3 * DH + NUM_DP   # fused q|k|v|q·emb_k^T output width per head


def _encoder_kernel(
    hidden_ref, mask_ref, graph_ref,
    wqkve_ref, bqkve_ref, wo_ref, bo_ref, ln1g_ref, ln1b_ref,
    wi_ref, bi_ref, wo2_ref, bo2_ref, ln2g_ref, ln2b_ref, embv_ref,
    out_ref,
    *, batch, seq, hdim, nheads, dh, num_dp, eps):
  """One full BertGraphLayer per grid step; hidden state resident in VMEM."""
  n = batch * nheads
  kproj = 3 * dh + num_dp
  f32 = jnp.float32
  bf16 = jnp.bfloat16

  # Layer 0: seed the resident hidden-state block from the kernel input.
  @pl.when(pl.program_id(0) == 0)
  def _init():
    out_ref[...] = hidden_ref[...]

  def over_batch(x):
    """(NH, ...) -> (B*NH, ...) via a free major-dim broadcast (no HBM replication)."""
    return jnp.broadcast_to(x[None], (batch,) + x.shape).reshape((n,) + x.shape[1:])

  h3 = out_ref[...]                                       # (B, S, H) f32, resident
  h2 = h3.reshape(batch * seq, hdim)                      # (B*S, H)
  hb = jnp.broadcast_to(h3[:, None], (batch, nheads, seq, hdim))
  hb = hb.reshape(n, seq, hdim).astype(bf16)              # (N, S, H) bf16

  # Fused projection: one einsum produces q | k | v | q·emb_k^T per head.
  # q (and the q·emb_k^T columns) are pre-scaled by 1/sqrt(dh) wrapper-side.
  wb = over_batch(wqkve_ref[0])                           # (N, H, KPROJ) bf16
  bb = over_batch(bqkve_ref[0])                           # (N, 1, KPROJ) f32
  qkve = jnp.einsum('nsd,ndk->nsk', hb, wb,
                    preferred_element_type=f32) + bb      # (N, S, KPROJ) f32
  q = qkve[..., 0:dh]
  k = qkve[..., dh:2 * dh]
  v = qkve[..., 2 * dh:3 * dh]
  qe = qkve[..., 3 * dh:kproj]                            # (N, S, NUM_DP)

  # Content attention scores (q already scaled), batched over (batch*head).
  scores = jnp.einsum('nqd,nkd->nqk', q.astype(bf16), k.astype(bf16),
                      preferred_element_type=f32)         # (N, S, S)

  # Per-relation masks computed ONCE per batch, broadcast over heads (major dim).
  g = graph_ref[...]                                      # (B, S, S) int32
  rel_mask = [
      jnp.broadcast_to((g == r)[:, None], (batch, nheads, seq, seq)).reshape(n, seq, seq)
      for r in range(num_dp)
  ]

  # Graph relative-key term (div_sqrt=True): rel[n,i,j] = q_s[n,i,:]·emb_k[g[n,i,j],:]
  # realized as the fused qe columns gathered by id (NUM_DP-way unrolled select).
  rel = jnp.where(rel_mask[0], qe[..., 0:1], 0.0)
  for r in range(1, num_dp):
    rel = rel + jnp.where(rel_mask[r], qe[..., r:r + 1], 0.0)
  scores = scores + rel

  mask_b = jnp.broadcast_to(mask_ref[...][:, None],
                            (batch, nheads, 1, seq)).reshape(n, 1, seq)
  scores = scores + mask_b                                # additive attention mask

  # Softmax over keys in f32 (attention dropout p=0, head_mask=None).
  m = jnp.max(scores, axis=-1, keepdims=True)
  e = jnp.exp(scores - m)
  denom = jnp.sum(e, axis=-1, keepdims=True)
  p = e * pl.reciprocal(denom, approx=True)               # (N, S, S) f32

  # Context + graph relative-value term:
  #   ctx[n,i,:] = sum_j p[n,i,j] * (v[n,j,:] + emb_v[g[n,i,j],:])
  ctx = jnp.einsum('nqk,nkd->nqd', p.astype(bf16), v.astype(bf16),
                   preferred_element_type=f32)            # (N, S, DH)
  for r in range(num_dp):
    wr = jnp.sum(jnp.where(rel_mask[r], p, 0.0), axis=-1, keepdims=True)  # (N,S,1)
    ctx = ctx + wr * embv_ref[0, r:r + 1, :]              # += mass_r * emb_v[r]

  # BertSelfOutput: head-split dense (wo broadcast over batch in-kernel),
  # head sum, residual, LayerNorm.
  wo_b = over_batch(wo_ref[0])                            # (N, DH, H) bf16
  attn_n = jnp.einsum('nsd,ndo->nso', ctx.astype(bf16), wo_b,
                      preferred_element_type=f32)         # (N, S, H)
  attn4 = attn_n.reshape(batch, nheads, seq, hdim)
  attn = attn4[:, 0]
  for hh in range(1, nheads):
    attn = attn + attn4[:, hh]
  # TODO(synk): a 'bhsd,hdo->bso' multi-contraction would fold this head sum into
  # the MXU accumulator; kept as explicit adds to avoid a risky dot_general lowering.

  x = attn.reshape(batch * seq, hdim) + bo_ref[0] + h2
  mu = jnp.mean(x, axis=-1, keepdims=True)
  var = jnp.mean((x - mu) ** 2, axis=-1, keepdims=True)
  x = (x - mu) * jax.lax.rsqrt(var + eps) * ln1g_ref[0] + ln1b_ref[0]

  # BertIntermediate (gelu_new = tanh GELU) + BertOutput (residual + LayerNorm).
  inter = jnp.dot(x.astype(bf16), wi_ref[0], preferred_element_type=f32) + bi_ref[0]
  inter = jax.nn.gelu(inter, approximate=True)
  y = jnp.dot(inter.astype(bf16), wo2_ref[0], preferred_element_type=f32) + bo2_ref[0]
  y = y + x
  mu2 = jnp.mean(y, axis=-1, keepdims=True)
  var2 = jnp.mean((y - mu2) ** 2, axis=-1, keepdims=True)
  y = (y - mu2) * jax.lax.rsqrt(var2 + eps) * ln2g_ref[0] + ln2b_ref[0]

  out_ref[...] = y.reshape(batch, seq, hdim)


def _prep_layer(p):
  """Wrapper-side (free) rearrangement: head-major layouts, fused QKV+emb_k weight,
  q pre-scaling, bf16 weight casts. NO batch replication."""
  scale = 1.0 / math.sqrt(DH)

  def per_head_w(w):                  # (H, H) -> (NH, H, DH)
    return w.reshape(H, NH, DH).transpose(1, 0, 2)

  def per_head_b(b):                  # (1, H) -> (NH, 1, DH)
    return b.reshape(NH, DH)[:, None, :]

  wq, wk, wv = per_head_w(p["wq"]), per_head_w(p["wk"]), per_head_w(p["wv"])
  bq, bk, bv = per_head_b(p["bq"]), per_head_b(p["bk"]), per_head_b(p["bv"])

  embk_t = p["emb_k"].T                                   # (DH, NUM_DP)
  wqe = jnp.einsum('nhd,dr->nhr', wq, embk_t)             # (NH, H, NUM_DP)
  bqe = jnp.einsum('nod,dr->nor', bq, embk_t)             # (NH, 1, NUM_DP)

  # Fused weight/bias:  [ q*scale | k | v | (q @ emb_k^T)*scale ]
  w_qkve = jnp.concatenate([wq * scale, wk, wv, wqe * scale], axis=-1)  # (NH,H,KPROJ)
  b_qkve = jnp.concatenate([bq * scale, bk, bv, bqe * scale], axis=-1)  # (NH,1,KPROJ)

  wo_h = p["wo"].reshape(NH, DH, H)   # SelfOutput dense: input features are head-major

  bf16 = jnp.bfloat16
  return [
      w_qkve.astype(bf16), b_qkve,
      wo_h.astype(bf16), p["bo"], p["ln1_g"], p["ln1_b"],
      p["wi"].astype(bf16), p["bi"],
      p["wo2"].astype(bf16), p["bo2"], p["ln2_g"], p["ln2_b"],
      p["emb_v"],
  ]


def bert_graph_encoder(hidden, mask_add, graph, layer_params):
  """BertGraphEncoder.forward (output_hidden_states / output_attentions = False)."""
  num_layers = len(layer_params)
  # Stack per-layer params along a leading layer axis -> one fused pallas_call.
  stacked = [jnp.stack(arrs, axis=0)
             for arrs in zip(*[_prep_layer(p) for p in layer_params])]

  def const_spec(shape):
    zeros = (0,) * len(shape)
    return pl.BlockSpec(tuple(shape), lambda l: zeros)

  def layer_spec(shape):
    zeros = (0,) * len(shape)
    return pl.BlockSpec((1,) + tuple(shape), lambda l: (l,) + zeros)

  in_specs = [
      const_spec((B, S, H)),            # hidden_states (read once, layer 0)
      const_spec((B, 1, S)),            # additive attention mask (no head replication)
      const_spec((B, S, S)),            # graph relation ids (no head replication)
  ] + [layer_spec(a.shape[1:]) for a in stacked]

  # Same block for every layer -> hidden state resident in VMEM across layers.
  out_spec = pl.BlockSpec((B, S, H), lambda l: (0, 0, 0))

  out = pl.pallas_call(
      functools.partial(_encoder_kernel, batch=B, seq=S, hdim=H,
                        nheads=NH, dh=DH, num_dp=NUM_DP, eps=EPS),
      out_shape=jax.ShapeDtypeStruct((B, S, H), jnp.float32),
      grid_spec=pltpu.PrefetchScalarGridSpec(
          num_scalar_prefetch=0,
          grid=(num_layers,),
          in_specs=in_specs,
          out_specs=out_spec),
      compiler_params=pltpu.CompilerParams(
          dimension_semantics=("arbitrary",)),
      input_output_aliases={0: 0},      # reuse the hidden HBM buffer for the output
  )(hidden, mask_add, graph, *stacked)
  return (out,)


def init_layer_params(key):
  ks = jax.random.split(key, 8)

  def lin(k, din, dout):
    return 0.02 * jax.random.normal(k, (din, dout), jnp.float32)

  return {
      # attention projections (weights stored as (in, out) = torch weight.T)
      "wq": lin(ks[0], H, H), "bq": jnp.zeros((1, H), jnp.float32),
      "wk": lin(ks[1], H, H), "bk": jnp.zeros((1, H), jnp.float32),
      "wv": lin(ks[2], H, H), "bv": jnp.zeros((1, H), jnp.float32),
      # BertSelfOutput
      "wo": lin(ks[3], H, H), "bo": jnp.zeros((1, H), jnp.float32),
      "ln1_g": jnp.ones((1, H), jnp.float32),
      "ln1_b": jnp.zeros((1, H), jnp.float32),
      # BertIntermediate / BertOutput
      "wi": lin(ks[4], H, INTER), "bi": jnp.zeros((1, INTER), jnp.float32),
      "wo2": lin(ks[5], INTER, H), "bo2": jnp.zeros((1, H), jnp.float32),
      "ln2_g": jnp.ones((1, H), jnp.float32),
      "ln2_b": jnp.zeros((1, H), jnp.float32),
      # graph relation embeddings (dp_relation_k / dp_relation_v)
      "emb_k": 0.02 * jax.random.normal(ks[6], (NUM_DP, DH), jnp.float32),
      "emb_v": 0.02 * jax.random.normal(ks[7], (NUM_DP, DH), jnp.float32),
  }


if __name__ == "__main__":
  key = jax.random.PRNGKey(0)
  keys = jax.random.split(key, 2 + NUM_LAYERS)
  kh, kg, layer_keys = keys[0], keys[1], keys[2:]

  hidden = jax.random.normal(kh, (B, S, H), jnp.float32)
  graph = jax.random.randint(kg, (B, S, S), 0, NUM_DP, dtype=jnp.int32)

  # standard BERT additive mask: 0 for real tokens, -10000 for padding
  pad = jnp.ones((B, S), jnp.float32).at[1, S - 2:].set(0.0)
  mask_add = ((1.0 - pad) * -10000.0).reshape(B, 1, S)

  layer_params = [init_layer_params(k) for k in layer_keys]

  out = bert_graph_encoder(hidden, mask_add, graph, layer_params)[0]
  jax.block_until_ready(out)
  assert out.shape == (B, S, H)
  assert bool(jnp.all(jnp.isfinite(out)))
  print("KERNEL_OK")
</pallas_src>

<mosaic_0001>
module attributes {stable_mosaic.version = 11 : i64} {
  func.func @_encoder_kernel(%arg0: i32, %arg1: memref<2x8x32xf32, #tpu.memory_space<vmem>>, %arg2: memref<2x1x8xf32, #tpu.memory_space<vmem>>, %arg3: memref<2x8x8xi32, #tpu.memory_space<vmem>>, %arg4: memref<1x4x32x28xbf16, #tpu.memory_space<vmem>>, %arg5: memref<1x4x1x28xf32, #tpu.memory_space<vmem>>, %arg6: memref<1x4x8x32xbf16, #tpu.memory_space<vmem>>, %arg7: memref<1x1x32xf32, #tpu.memory_space<vmem>>, %arg8: memref<1x1x32xf32, #tpu.memory_space<vmem>>, %arg9: memref<1x1x32xf32, #tpu.memory_space<vmem>>, %arg10: memref<1x32x64xbf16, #tpu.memory_space<vmem>>, %arg11: memref<1x1x64xf32, #tpu.memory_space<vmem>>, %arg12: memref<1x64x32xbf16, #tpu.memory_space<vmem>>, %arg13: memref<1x1x32xf32, #tpu.memory_space<vmem>>, %arg14: memref<1x1x32xf32, #tpu.memory_space<vmem>>, %arg15: memref<1x1x32xf32, #tpu.memory_space<vmem>>, %arg16: memref<1x4x8xf32, #tpu.memory_space<vmem>>, %arg17: memref<2x8x32xf32, #tpu.memory_space<vmem>>) attributes {dimension_semantics = [#tpu.dimension_semantics<arbitrary>], iteration_bounds = array<i64: 2>, scalar_prefetch = 0 : i64, scratch_operands = 0 : i64, tpu.core_type = #tpu.core_type<tc>, window_params = [{pipeline_mode = #tpu.pipeline_mode<synchronous>, transform_indices = @transform_0, window_bounds = array<i64: 2, 8, 32>}, {pipeline_mode = #tpu.pipeline_mode<synchronous>, transform_indices = @transform_1, window_bounds = array<i64: 2, 1, 8>}, {pipeline_mode = #tpu.pipeline_mode<synchronous>, transform_indices = @transform_2, window_bounds = array<i64: 2, 8, 8>}, {transform_indices = @transform_3, window_bounds = array<i64: 1, 4, 32, 28>}, {transform_indices = @transform_4, window_bounds = array<i64: 1, 4, 1, 28>}, {transform_indices = @transform_5, window_bounds = array<i64: 1, 4, 8, 32>}, {transform_indices = @transform_6, window_bounds = array<i64: 1, 1, 32>}, {transform_indices = @transform_7, window_bounds = array<i64: 1, 1, 32>}, {transform_indices = @transform_8, window_bounds = array<i64: 1, 1, 32>}, {transform_indices = @transform_9, window_bounds = array<i64: 1, 32, 64>}, {transform_indices = @transform_10, window_bounds = array<i64: 1, 1, 64>}, {transform_indices = @transform_11, window_bounds = array<i64: 1, 64, 32>}, {transform_indices = @transform_12, window_bounds = array<i64: 1, 1, 32>}, {transform_indices = @transform_13, window_bounds = array<i64: 1, 1, 32>}, {transform_indices = @transform_14, window_bounds = array<i64: 1, 1, 32>}, {transform_indices = @transform_15, window_bounds = array<i64: 1, 4, 8>}, {pipeline_mode = #tpu.pipeline_mode<synchronous>, transform_indices = @transform_16, window_bounds = array<i64: 2, 8, 32>}]} {
    %c0_i32 = arith.constant 0 : i32
    %0 = arith.cmpi eq, %arg0, %c0_i32 : i32
    %1 = arith.extui %0 : i1 to i32
    %c0_i32_0 = arith.constant 0 : i32
    %2 = arith.cmpi ne, %1, %c0_i32_0 : i32
    scf.if %2 {
      %c0_94 = arith.constant 0 : index
      %c0_95 = arith.constant 0 : index
      %c0_96 = arith.constant 0 : index
      %255 = vector.load %arg1[%c0_94, %c0_95, %c0_96] : memref<2x8x32xf32, #tpu.memory_space<vmem>>, vector<2x8x32xf32>
      %c0_97 = arith.constant 0 : index
      %c0_98 = arith.constant 0 : index
      %c0_99 = arith.constant 0 : index
      %256 = vector.load %arg17[%c0_97, %c0_98, %c0_99] : memref<2x8x32xf32, #tpu.memory_space<vmem>>, vector<2x8x32xf32>
      tpu.vector_store %arg17[%c0_97, %c0_98, %c0_99], %255 {strides = array<i32>} : memref<2x8x32xf32, #tpu.memory_space<vmem>>, vector<2x8x32xf32>,
    } else {
    }
    %c0 = arith.constant 0 : index
    %c0_1 = arith.constant 0 : index
    %c0_2 = arith.constant 0 : index
    %3 = vector.load %arg17[%c0, %c0_1, %c0_2] : memref<2x8x32xf32, #tpu.memory_space<vmem>>, vector<2x8x32xf32>
    %4 = vector.shape_cast %3 : vector<2x8x32xf32> to vector<16x32xf32>
    %5 = vector.shape_cast %3 : vector<2x8x32xf32> to vector<2x1x8x32xf32>
    %6 = vector.shape_cast %5 : vector<2x1x8x32xf32> to vector<2x1x8x32xf32>
    %7 = vector.broadcast %6 : vector<2x1x8x32xf32> to vector<2x4x8x32xf32>
    %8 = vector.shape_cast %7 : vector<2x4x8x32xf32> to vector<8x8x32xf32>
    %9 = arith.truncf %8 : vector<8x8x32xf32> to vector<8x8x32xbf16>
    %c0_3 = arith.constant 0 : index
    %c0_4 = arith.constant 0 : index
    %c0_5 = arith.constant 0 : index
    %c0_6 = arith.constant 0 : index
    %10 = vector.load %arg4[%c0_3, %c0_4, %c0_5, %c0_6] : memref<1x4x32x28xbf16, #tpu.memory_space<vmem>>, vector<1x4x32x28xbf16>
    %11 = vector.shape_cast %10 : vector<1x4x32x28xbf16> to vector<4x32x28xbf16>
    %12 = vector.shape_cast %11 : vector<4x32x28xbf16> to vector<1x4x32x28xbf16>
    %13 = vector.shape_cast %12 : vector<1x4x32x28xbf16> to vector<1x4x32x28xbf16>
    %14 = vector.broadcast %13 : vector<1x4x32x28xbf16> to vector<2x4x32x28xbf16>
    %15 = vector.shape_cast %14 : vector<2x4x32x28xbf16> to vector<8x32x28xbf16>
    %c0_7 = arith.constant 0 : index
    %c0_8 = arith.constant 0 : index
    %c0_9 = arith.constant 0 : index
    %c0_10 = arith.constant 0 : index
    %16 = vector.load %arg5[%c0_7, %c0_8, %c0_9, %c0_10] : memref<1x4x1x28xf32, #tpu.memory_space<vmem>>, vector<1x4x1x28xf32>
    %17 = vector.shape_cast %16 : vector<1x4x1x28xf32> to vector<4x1x28xf32>
    %18 = vector.shape_cast %17 : vector<4x1x28xf32> to vector<1x4x1x28xf32>
    %19 = vector.shape_cast %18 : vector<1x4x1x28xf32> to vector<1x4x1x28xf32>
    %20 = vector.broadcast %19 : vector<1x4x1x28xf32> to vector<2x4x1x28xf32>
    %21 = vector.shape_cast %20 : vector<2x4x1x28xf32> to vector<8x1x28xf32>
    "tpu.trace_start"() <{level = 10 : i32, message = "nsd,ndk->nsk"}> : () -> ()
    %cst = arith.constant dense<0.000000e+00> : vector<8x8x28xf32>
    %22 = tpu.matmul %9, %15, %cst {dimension_numbers = #tpu.dot_dimension_numbers<[2], [1], [1], [2], [0, 0, 0, 1, 1, 2], [0], [0]>} : vector<8x8x32xbf16>, vector<8x32x28xbf16>, vector<8x8x28xf32> -> vector<8x8x28xf32>
    "tpu.trace_stop"() : () -> ()
    %23 = vector.broadcast %21 : vector<8x1x28xf32> to vector<8x8x28xf32>
    %24 = arith.addf %22, %23 : vector<8x8x28xf32>
    %25 = vector.extract_strided_slice %24 {offsets = [0, 0, 0], sizes = [8, 8, 8], strides = [1, 1, 1]} : vector<8x8x28xf32> to vector<8x8x8xf32>
    %26 = vector.extract_strided_slice %24 {offsets = [0, 0, 8], sizes = [8, 8, 8], strides = [1, 1, 1]} : vector<8x8x28xf32> to vector<8x8x8xf32>
    %27 = vector.extract_strided_slice %24 {offsets = [0, 0, 16], sizes = [8, 8, 8], strides = [1, 1, 1]} : vector<8x8x28xf32> to vector<8x8x8xf32>
    %28 = vector.extract_strided_slice %24 {offsets = [0, 0, 24], sizes = [8, 8, 4], strides = [1, 1, 1]} : vector<8x8x28xf32> to vector<8x8x4xf32>
    %29 = arith.truncf %25 : vector<8x8x8xf32> to vector<8x8x8xbf16>
    %30 = arith.truncf %26 : vector<8x8x8xf32> to vector<8x8x8xbf16>
    "tpu.trace_start"() <{level = 10 : i32, message = "nqd,nkd->nqk"}> : () -> ()
    %cst_11 = arith.constant dense<0.000000e+00> : vector<8x8x8xf32>
    %31 = tpu.matmul %29, %30, %cst_11 {dimension_numbers = #tpu.dot_dimension_numbers<[2], [2], [1], [1], [0, 0, 0, 1, 1, 1], [0], [0]>} : vector<8x8x8xbf16>, vector<8x8x8xbf16>, vector<8x8x8xf32> -> vector<8x8x8xf32>
    "tpu.trace_stop"() : () -> ()
    %c0_12 = arith.constant 0 : index
    %c0_13 = arith.constant 0 : index
    %c0_14 = arith.constant 0 : index
    %32 = vector.load %arg3[%c0_12, %c0_13, %c0_14] : memref<2x8x8xi32, #tpu.memory_space<vmem>>, vector<2x8x8xi32>
    %c0_i32_15 = arith.constant 0 : i32
    %33 = vector.broadcast %c0_i32_15 : i32 to vector<2x8x8xi32>
    %34 = arith.cmpi eq, %32, %33 : vector<2x8x8xi32>
    %35 = vector.shape_cast %34 : vector<2x8x8xi1> to vector<2x1x8x8xi1>
    %36 = vector.shape_cast %35 : vector<2x1x8x8xi1> to vector<2x1x8x8xi1>
    %37 = vector.broadcast %36 : vector<2x1x8x8xi1> to vector<2x4x8x8xi1>
    %38 = vector.shape_cast %37 : vector<2x4x8x8xi1> to vector<8x8x8xi1>
    %c1_i32 = arith.constant 1 : i32
    %39 = vector.broadcast %c1_i32 : i32 to vector<2x8x8xi32>
    %40 = arith.cmpi eq, %32, %39 : vector<2x8x8xi32>
    %41 = vector.shape_cast %40 : vector<2x8x8xi1> to vector<2x1x8x8xi1>
    %42 = vector.shape_cast %41 : vector<2x1x8x8xi1> to vector<2x1x8x8xi1>
    %43 = vector.broadcast %42 : vector<2x1x8x8xi1> to vector<2x4x8x8xi1>
    %44 = vector.shape_cast %43 : vector<2x4x8x8xi1> to vector<8x8x8xi1>
    %c2_i32 = arith.constant 2 : i32
    %45 = vector.broadcast %c2_i32 : i32 to vector<2x8x8xi32>
    %46 = arith.cmpi eq, %32, %45 : vector<2x8x8xi32>
    %47 = vector.shape_cast %46 : vector<2x8x8xi1> to vector<2x1x8x8xi1>
    %48 = vector.shape_cast %47 : vector<2x1x8x8xi1> to vector<2x1x8x8xi1>
    %49 = vector.broadcast %48 : vector<2x1x8x8xi1> to vector<2x4x8x8xi1>
    %50 = vector.shape_cast %49 : vector<2x4x8x8xi1> to vector<8x8x8xi1>
    %c3_i32 = arith.constant 3 : i32
    %51 = vector.broadcast %c3_i32 : i32 to vector<2x8x8xi32>
    %52 = arith.cmpi eq, %32, %51 : vector<2x8x8xi32>
    %53 = vector.shape_cast %52 : vector<2x8x8xi1> to vector<2x1x8x8xi1>
    %54 = vector.shape_cast %53 : vector<2x1x8x8xi1> to vector<2x1x8x8xi1>
    %55 = vector.broadcast %54 : vector<2x1x8x8xi1> to vector<2x4x8x8xi1>
    %56 = vector.shape_cast %55 : vector<2x4x8x8xi1> to vector<8x8x8xi1>
    %57 = vector.extract_strided_slice %28 {offsets = [0, 0, 0], sizes = [8, 8, 1], strides = [1, 1, 1]} : vector<8x8x4xf32> to vector<8x8x1xf32>
    %cst_16 = arith.constant 0.000000e+00 : f32
    %58 = vector.shape_cast %57 : vector<8x8x1xf32> to vector<8x8x1xf32>
    %59 = vector.broadcast %58 : vector<8x8x1xf32> to vector<8x8x8xf32>
    %60 = vector.broadcast %cst_16 : f32 to vector<8x8x8xf32>
    %61 = arith.select %38, %59, %60 : vector<8x8x8xi1>, vector<8x8x8xf32>
    %62 = vector.extract_strided_slice %28 {offsets = [0, 0, 1], sizes = [8, 8, 1], strides = [1, 1, 1]} : vector<8x8x4xf32> to vector<8x8x1xf32>
    %cst_17 = arith.constant 0.000000e+00 : f32
    %63 = vector.shape_cast %62 : vector<8x8x1xf32> to vector<8x8x1xf32>
    %64 = vector.broadcast %63 : vector<8x8x1xf32> to vector<8x8x8xf32>
    %65 = vector.broadcast %cst_17 : f32 to vector<8x8x8xf32>
    %66 = arith.select %44, %64, %65 : vector<8x8x8xi1>, vector<8x8x8xf32>
    %67 = arith.addf %61, %66 : vector<8x8x8xf32>
    %68 = vector.extract_strided_slice %28 {offsets = [0, 0, 2], sizes = [8, 8, 1], strides = [1, 1, 1]} : vector<8x8x4xf32> to vector<8x8x1xf32>
    %cst_18 = arith.constant 0.000000e+00 : f32
    %69 = vector.shape_cast %68 : vector<8x8x1xf32> to vector<8x8x1xf32>
    %70 = vector.broadcast %69 : vector<8x8x1xf32> to vector<8x8x8xf32>
    %71 = vector.broadcast %cst_18 : f32 to vector<8x8x8xf32>
    %72 = arith.select %50, %70, %71 : vector<8x8x8xi1>, vector<8x8x8xf32>
    %73 = arith.addf %67, %72 : vector<8x8x8xf32>
    %74 = vector.extract_strided_slice %28 {offsets = [0, 0, 3], sizes = [8, 8, 1], strides = [1, 1, 1]} : vector<8x8x4xf32> to vector<8x8x1xf32>
    %cst_19 = arith.constant 0.000000e+00 : f32
    %75 = vector.shape_cast %74 : vector<8x8x1xf32> to vector<8x8x1xf32>
    %76 = vector.broadcast %75 : vector<8x8x1xf32> to vector<8x8x8xf32>
    %77 = vector.broadcast %cst_19 : f32 to vector<8x8x8xf32>
    %78 = arith.select %56, %76, %77 : vector<8x8x8xi1>, vector<8x8x8xf32>
    %79 = arith.addf %73, %78 : vector<8x8x8xf32>
    %80 = arith.addf %31, %79 : vector<8x8x8xf32>
    %c0_20 = arith.constant 0 : index
    %c0_21 = arith.constant 0 : index
    %c0_22 = arith.constant 0 : index
    %81 = vector.load %arg2[%c0_20, %c0_21, %c0_22] : memref<2x1x8xf32, #tpu.memory_space<vmem>>, vector<2x1x8xf32>
    %82 = vector.shape_cast %81 : vector<2x1x8xf32> to vector<2x1x1x8xf32>
    %83 = vector.shape_cast %82 : vector<2x1x1x8xf32> to vector<2x1x1x8xf32>
    %84 = vector.broadcast %83 : vector<2x1x1x8xf32> to vector<2x4x1x8xf32>
    %85 = vector.shape_cast %84 : vector<2x4x1x8xf32> to vector<8x1x8xf32>
    %86 = vector.broadcast %85 : vector<8x1x8xf32> to vector<8x8x8xf32>
    %87 = arith.addf %80, %86 : vector<8x8x8xf32>
    %cst_23 = arith.constant dense<0xFF800000> : vector<8x8xf32>
    %88 = vector.multi_reduction <maximumf>, %87, %cst_23 [2] : vector<8x8x8xf32> to vector<8x8xf32>
    %89 = vector.shape_cast %88 : vector<8x8xf32> to vector<8x8x1xf32>
    %90 = vector.broadcast %89 : vector<8x8x1xf32> to vector<8x8x8xf32>
    %91 = arith.subf %87, %90 : vector<8x8x8xf32>
    %92 = math.exp %91 : vector<8x8x8xf32>
    %cst_24 = arith.constant dense<0.000000e+00> : vector<8x8xf32>
    %93 = vector.multi_reduction <add>, %92, %cst_24 [2] : vector<8x8x8xf32> to vector<8x8xf32>
    %94 = vector.shape_cast %93 : vector<8x8xf32> to vector<8x8x1xf32>
    %95 = tpu.reciprocal %94 {approx = true} : vector<8x8x1xf32> -> vector<8x8x1xf32>
    %96 = vector.broadcast %95 : vector<8x8x1xf32> to vector<8x8x8xf32>
    %97 = arith.mulf %92, %96 : vector<8x8x8xf32>
    %98 = arith.truncf %97 : vector<8x8x8xf32> to vector<8x8x8xbf16>
    %99 = arith.truncf %27 : vector<8x8x8xf32> to vector<8x8x8xbf16>
    "tpu.trace_start"() <{level = 10 : i32, message = "nqk,nkd->nqd"}> : () -> ()
    %cst_25 = arith.constant dense<0.000000e+00> : vector<8x8x8xf32>
    %100 = tpu.matmul %98, %99, %cst_25 {dimension_numbers = #tpu.dot_dimension_numbers<[2], [1], [1], [2], [0, 0, 0, 1, 1, 2], [0], [0]>} : vector<8x8x8xbf16>, vector<8x8x8xbf16>, vector<8x8x8xf32> -> vector<8x8x8xf32>
    %cst_26 = arith.constant 0.000000e+00 : f32
    "tpu.trace_stop"() : () -> ()
    %101 = vector.broadcast %cst_26 : f32 to vector<8x8x8xf32>
    %102 = arith.select %38, %97, %101 : vector<8x8x8xi1>, vector<8x8x8xf32>
    %cst_27 = arith.constant dense<0.000000e+00> : vector<8x8xf32>
    %103 = vector.multi_reduction <add>, %102, %cst_27 [2] : vector<8x8x8xf32> to vector<8x8xf32>
    %104 = vector.shape_cast %103 : vector<8x8xf32> to vector<8x8x1xf32>
    %c0_28 = arith.constant 0 : index
    %c0_29 = arith.constant 0 : index
    %c0_30 = arith.constant 0 : index
    %105 = vector.load %arg16[%c0_28, %c0_29, %c0_30] : memref<1x4x8xf32, #tpu.memory_space<vmem>>, vector<1x1x8xf32>
    %106 = vector.shape_cast %105 : vector<1x1x8xf32> to vector<1x8xf32>
    %107 = vector.shape_cast %106 : vector<1x8xf32> to vector<1x1x8xf32>
    %108 = vector.broadcast %104 : vector<8x8x1xf32> to vector<8x8x8xf32>
    %109 = vector.broadcast %107 : vector<1x1x8xf32> to vector<8x8x8xf32>
    %110 = arith.mulf %108, %109 : vector<8x8x8xf32>
    %111 = arith.addf %100, %110 : vector<8x8x8xf32>
    %cst_31 = arith.constant 0.000000e+00 : f32
    %112 = vector.broadcast %cst_31 : f32 to vector<8x8x8xf32>
    %113 = arith.select %44, %97, %112 : vector<8x8x8xi1>, vector<8x8x8xf32>
    %cst_32 = arith.constant dense<0.000000e+00> : vector<8x8xf32>
    %114 = vector.multi_reduction <add>, %113, %cst_32 [2] : vector<8x8x8xf32> to vector<8x8xf32>
    %115 = vector.shape_cast %114 : vector<8x8xf32> to vector<8x8x1xf32>
    %c0_33 = arith.constant 0 : index
    %c1 = arith.constant 1 : index
    %c0_34 = arith.constant 0 : index
    %116 = vector.load %arg16[%c0_33, %c1, %c0_34] : memref<1x4x8xf32, #tpu.memory_space<vmem>>, vector<1x1x8xf32>
    %117 = vector.shape_cast %116 : vector<1x1x8xf32> to vector<1x8xf32>
    %118 = vector.shape_cast %117 : vector<1x8xf32> to vector<1x1x8xf32>
    %119 = vector.broadcast %115 : vector<8x8x1xf32> to vector<8x8x8xf32>
    %120 = vector.broadcast %118 : vector<1x1x8xf32> to vector<8x8x8xf32>
    %121 = arith.mulf %119, %120 : vector<8x8x8xf32>
    %122 = arith.addf %111, %121 : vector<8x8x8xf32>
    %cst_35 = arith.constant 0.000000e+00 : f32
    %123 = vector.broadcast %cst_35 : f32 to vector<8x8x8xf32>
    %124 = arith.select %50, %97, %123 : vector<8x8x8xi1>, vector<8x8x8xf32>
    %cst_36 = arith.constant dense<0.000000e+00> : vector<8x8xf32>
    %125 = vector.multi_reduction <add>, %124, %cst_36 [2] : vector<8x8x8xf32> to vector<8x8xf32>
    %126 = vector.shape_cast %125 : vector<8x8xf32> to vector<8x8x1xf32>
    %c0_37 = arith.constant 0 : index
    %c2 = arith.constant 2 : index
    %c0_38 = arith.constant 0 : index
    %127 = vector.load %arg16[%c0_37, %c2, %c0_38] : memref<1x4x8xf32, #tpu.memory_space<vmem>>, vector<1x1x8xf32>
    %128 = vector.shape_cast %127 : vector<1x1x8xf32> to vector<1x8xf32>
    %129 = vector.shape_cast %128 : vector<1x8xf32> to vector<1x1x8xf32>
    %130 = vector.broadcast %126 : vector<8x8x1xf32> to vector<8x8x8xf32>
    %131 = vector.broadcast %129 : vector<1x1x8xf32> to vector<8x8x8xf32>
    %132 = arith.mulf %130, %131 : vector<8x8x8xf32>
    %133 = arith.addf %122, %132 : vector<8x8x8xf32>
    %cst_39 = arith.constant 0.000000e+00 : f32
    %134 = vector.broadcast %cst_39 : f32 to vector<8x8x8xf32>
    %135 = arith.select %56, %97, %134 : vector<8x8x8xi1>, vector<8x8x8xf32>
    %cst_40 = arith.constant dense<0.000000e+00> : vector<8x8xf32>
    %136 = vector.multi_reduction <add>, %135, %cst_40 [2] : vector<8x8x8xf32> to vector<8x8xf32>
    %137 = vector.shape_cast %136 : vector<8x8xf32> to vector<8x8x1xf32>
    %c0_41 = arith.constant 0 : index
    %c3 = arith.constant 3 : index
    %c0_42 = arith.constant 0 : index
    %138 = vector.load %arg16[%c0_41, %c3, %c0_42] : memref<1x4x8xf32, #tpu.memory_space<vmem>>, vector<1x1x8xf32>
    %139 = vector.shape_cast %138 : vector<1x1x8xf32> to vector<1x8xf32>
    %140 = vector.shape_cast %139 : vector<1x8xf32> to vector<1x1x8xf32>
    %141 = vector.broadcast %137 : vector<8x8x1xf32> to vector<8x8x8xf32>
    %142 = vector.broadcast %140 : vector<1x1x8xf32> to vector<8x8x8xf32>
    %143 = arith.mulf %141, %142 : vector<8x8x8xf32>
    %144 = arith.addf %133, %143 : vector<8x8x8xf32>
    %c0_43 = arith.constant 0 : index
    %c0_44 = arith.constant 0 : index
    %c0_45 = arith.constant 0 : index
    %c0_46 = arith.constant 0 : index
    %145 = vector.load %arg6[%c0_43, %c0_44, %c0_45, %c0_46] : memref<1x4x8x32xbf16, #tpu.memory_space<vmem>>, vector<1x4x8x32xbf16>
    %146 = vector.shape_cast %145 : vector<1x4x8x32xbf16> to vector<4x8x32xbf16>
    %147 = vector.shape_cast %146 : vector<4x8x32xbf16> to vector<1x4x8x32xbf16>
    %148 = vector.shape_cast %147 : vector<1x4x8x32xbf16> to vector<1x4x8x32xbf16>
    %149 = vector.broadcast %148 : vector<1x4x8x32xbf16> to vector<2x4x8x32xbf16>
    %150 = vector.shape_cast %149 : vector<2x4x8x32xbf16> to vector<8x8x32xbf16>
    %151 = arith.truncf %144 : vector<8x8x8xf32> to vector<8x8x8xbf16>
    "tpu.trace_start"() <{level = 10 : i32, message = "nsd,ndo->nso"}> : () -> ()
    %cst_47 = arith.constant dense<0.000000e+00> : vector<8x8x32xf32>
    %152 = tpu.matmul %151, %150, %cst_47 {dimension_numbers = #tpu.dot_dimension_numbers<[2], [1], [1], [2], [0, 0, 0, 1, 1, 2], [0], [0]>} : vector<8x8x8xbf16>, vector<8x8x32xbf16>, vector<8x8x32xf32> -> vector<8x8x32xf32>
    "tpu.trace_stop"() : () -> ()
    %153 = vector.shape_cast %152 : vector<8x8x32xf32> to vector<2x4x8x32xf32>
    %154 = vector.extract_strided_slice %153 {offsets = [0, 0, 0, 0], sizes = [2, 1, 8, 32], strides = [1, 1, 1, 1]} : vector<2x4x8x32xf32> to vector<2x1x8x32xf32>
    %155 = vector.shape_cast %154 : vector<2x1x8x32xf32> to vector<2x8x32xf32>
    %156 = vector.extract_strided_slice %153 {offsets = [0, 1, 0, 0], sizes = [2, 1, 8, 32], strides = [1, 1, 1, 1]} : vector<2x4x8x32xf32> to vector<2x1x8x32xf32>
    %157 = vector.shape_cast %156 : vector<2x1x8x32xf32> to vector<2x8x32xf32>
    %158 = arith.addf %155, %157 : vector<2x8x32xf32>
    %159 = vector.extract_strided_slice %153 {offsets = [0, 2, 0, 0], sizes = [2, 1, 8, 32], strides = [1, 1, 1, 1]} : vector<2x4x8x32xf32> to vector<2x1x8x32xf32>
    %160 = vector.shape_cast %159 : vector<2x1x8x32xf32> to vector<2x8x32xf32>
    %161 = arith.addf %158, %160 : vector<2x8x32xf32>
    %162 = vector.extract_strided_slice %153 {offsets = [0, 3, 0, 0], sizes = [2, 1, 8, 32], strides = [1, 1, 1, 1]} : vector<2x4x8x32xf32> to vector<2x1x8x32xf32>
    %163 = vector.shape_cast %162 : vector<2x1x8x32xf32> to vector<2x8x32xf32>
    %164 = arith.addf %161, %163 : vector<2x8x32xf32>
    %165 = vector.shape_cast %164 : vector<2x8x32xf32> to vector<16x32xf32>
    %c0_48 = arith.constant 0 : index
    %c0_49 = arith.constant 0 : index
    %c0_50 = arith.constant 0 : index
    %166 = vector.load %arg7[%c0_48, %c0_49, %c0_50] : memref<1x1x32xf32, #tpu.memory_space<vmem>>, vector<1x1x32xf32>
    %167 = vector.shape_cast %166 : vector<1x1x32xf32> to vector<1x32xf32>
    %168 = vector.broadcast %167 : vector<1x32xf32> to vector<16x32xf32>
    %169 = arith.addf %165, %168 : vector<16x32xf32>
    %170 = arith.addf %169, %4 : vector<16x32xf32>
    %cst_51 = arith.constant dense<0.000000e+00> : vector<16xf32>
    %171 = vector.multi_reduction <add>, %170, %cst_51 [1] : vector<16x32xf32> to vector<16xf32>
    %172 = vector.shape_cast %171 : vector<16xf32> to vector<16x1xf32>
    %cst_52 = arith.constant 3.200000e+01 : f32
    %173 = vector.broadcast %cst_52 : f32 to vector<16x1xf32>
    %174 = arith.divf %172, %173 : vector<16x1xf32>
    %175 = vector.broadcast %174 : vector<16x1xf32> to vector<16x32xf32>
    %176 = arith.subf %170, %175 : vector<16x32xf32>
    %177 = arith.mulf %176, %176 : vector<16x32xf32>
    %cst_53 = arith.constant dense<0.000000e+00> : vector<16xf32>
    %178 = vector.multi_reduction <add>, %177, %cst_53 [1] : vector<16x32xf32> to vector<16xf32>
    %179 = vector.shape_cast %178 : vector<16xf32> to vector<16x1xf32>
    %cst_54 = arith.constant 3.200000e+01 : f32
    %180 = vector.broadcast %cst_54 : f32 to vector<16x1xf32>
    %181 = arith.divf %179, %180 : vector<16x1xf32>
    %182 = vector.broadcast %174 : vector<16x1xf32> to vector<16x32xf32>
    %183 = arith.subf %170, %182 : vector<16x32xf32>
    %cst_55 = arith.constant 9.99999996E-13 : f32
    %184 = vector.broadcast %cst_55 : f32 to vector<16x1xf32>
    %185 = arith.addf %181, %184 : vector<16x1xf32>
    %186 = math.rsqrt %185 : vector<16x1xf32>
    %187 = vector.broadcast %186 : vector<16x1xf32> to vector<16x32xf32>
    %188 = arith.mulf %183, %187 : vector<16x32xf32>
    %c0_56 = arith.constant 0 : index
    %c0_57 = arith.constant 0 : index
    %c0_58 = arith.constant 0 : index
    %189 = vector.load %arg8[%c0_56, %c0_57, %c0_58] : memref<1x1x32xf32, #tpu.memory_space<vmem>>, vector<1x1x32xf32>
    %190 = vector.shape_cast %189 : vector<1x1x32xf32> to vector<1x32xf32>
    %191 = vector.broadcast %190 : vector<1x32xf32> to vector<16x32xf32>
    %192 = arith.mulf %188, %191 : vector<16x32xf32>
    %c0_59 = arith.constant 0 : index
    %c0_60 = arith.constant 0 : index
    %c0_61 = arith.constant 0 : index
    %193 = vector.load %arg9[%c0_59, %c0_60, %c0_61] : memref<1x1x32xf32, #tpu.memory_space<vmem>>, vector<1x1x32xf32>
    %194 = vector.shape_cast %193 : vector<1x1x32xf32> to vector<1x32xf32>
    %195 = vector.broadcast %194 : vector<1x32xf32> to vector<16x32xf32>
    %196 = arith.addf %192, %195 : vector<16x32xf32>
    %197 = arith.truncf %196 : vector<16x32xf32> to vector<16x32xbf16>
    %c0_62 = arith.constant 0 : index
    %c0_63 = arith.constant 0 : index
    %c0_64 = arith.constant 0 : index
    %198 = vector.load %arg10[%c0_62, %c0_63, %c0_64] : memref<1x32x64xbf16, #tpu.memory_space<vmem>>, vector<1x32x64xbf16>
    %199 = vector.shape_cast %198 : vector<1x32x64xbf16> to vector<32x64xbf16>
    %cst_65 = arith.constant dense<0.000000e+00> : vector<16x64xf32>
    %200 = tpu.matmul %197, %199, %cst_65 {dimension_numbers = #tpu.dot_dimension_numbers<[1], [0], [0], [1], [0, 0, 1, 1], [], []>} : vector<16x32xbf16>, vector<32x64xbf16>, vector<16x64xf32> -> vector<16x64xf32>
    %c0_66 = arith.constant 0 : index
    %c0_67 = arith.constant 0 : index
    %c0_68 = arith.constant 0 : index
    %201 = vector.load %arg11[%c0_66, %c0_67, %c0_68] : memref<1x1x64xf32, #tpu.memory_space<vmem>>, vector<1x1x64xf32>
    %202 = vector.shape_cast %201 : vector<1x1x64xf32> to vector<1x64xf32>
    %203 = vector.broadcast %202 : vector<1x64xf32> to vector<16x64xf32>
    %204 = arith.addf %200, %203 : vector<16x64xf32>
    %205 = arith.mulf %204, %204 : vector<16x64xf32>
    %206 = arith.mulf %204, %205 : vector<16x64xf32>
    %cst_69 = arith.constant 4.471500e-02 : f32
    %207 = vector.broadcast %cst_69 : f32 to vector<16x64xf32>
    %208 = arith.mulf %207, %206 : vector<16x64xf32>
    %209 = arith.addf %204, %208 : vector<16x64xf32>
    %cst_70 = arith.constant 0.797884583 : f32
    %210 = vector.broadcast %cst_70 : f32 to vector<16x64xf32>
    %211 = arith.mulf %210, %209 : vector<16x64xf32>
    %212 = math.tanh %211 : vector<16x64xf32>
    %cst_71 = arith.constant 1.000000e+00 : f32
    %213 = vector.broadcast %cst_71 : f32 to vector<16x64xf32>
    %214 = arith.addf %213, %212 : vector<16x64xf32>
    %cst_72 = arith.constant 5.000000e-01 : f32
    %215 = vector.broadcast %cst_72 : f32 to vector<16x64xf32>
    %216 = arith.mulf %215, %214 : vector<16x64xf32>
    %217 = arith.mulf %204, %216 : vector<16x64xf32>
    %218 = arith.truncf %217 : vector<16x64xf32> to vector<16x64xbf16>
    %c0_73 = arith.constant 0 : index
    %c0_74 = arith.constant 0 : index
    %c0_75 = arith.constant 0 : index
    %219 = vector.load %arg12[%c0_73, %c0_74, %c0_75] : memref<1x64x32xbf16, #tpu.memory_space<vmem>>, vector<1x64x32xbf16>
    %220 = vector.shape_cast %219 : vector<1x64x32xbf16> to vector<64x32xbf16>
    %cst_76 = arith.constant dense<0.000000e+00> : vector<16x32xf32>
    %221 = tpu.matmul %218, %220, %cst_76 {dimension_numbers = #tpu.dot_dimension_numbers<[1], [0], [0], [1], [0, 0, 1, 1], [], []>} : vector<16x64xbf16>, vector<64x32xbf16>, vector<16x32xf32> -> vector<16x32xf32>
    %c0_77 = arith.constant 0 : index
    %c0_78 = arith.constant 0 : index
    %c0_79 = arith.constant 0 : index
    %222 = vector.load %arg13[%c0_77, %c0_78, %c0_79] : memref<1x1x32xf32, #tpu.memory_space<vmem>>, vector<1x1x32xf32>
    %223 = vector.shape_cast %222 : vector<1x1x32xf32> to vector<1x32xf32>
    %224 = vector.broadcast %223 : vector<1x32xf32> to vector<16x32xf32>
    %225 = arith.addf %221, %224 : vector<16x32xf32>
    %226 = arith.addf %225, %196 : vector<16x32xf32>
    %cst_80 = arith.constant dense<0.000000e+00> : vector<16xf32>
    %227 = vector.multi_reduction <add>, %226, %cst_80 [1] : vector<16x32xf32> to vector<16xf32>
    %228 = vector.shape_cast %227 : vector<16xf32> to vector<16x1xf32>
    %cst_81 = arith.constant 3.200000e+01 : f32
    %229 = vector.broadcast %cst_81 : f32 to vector<16x1xf32>
    %230 = arith.divf %228, %229 : vector<16x1xf32>
    %231 = vector.broadcast %230 : vector<16x1xf32> to vector<16x32xf32>
    %232 = arith.subf %226, %231 : vector<16x32xf32>
    %233 = arith.mulf %232, %232 : vector<16x32xf32>
    %cst_82 = arith.constant dense<0.000000e+00> : vector<16xf32>
    %234 = vector.multi_reduction <add>, %233, %cst_82 [1] : vector<16x32xf32> to vector<16xf32>
    %235 = vector.shape_cast %234 : vector<16xf32> to vector<16x1xf32>
    %cst_83 = arith.constant 3.200000e+01 : f32
    %236 = vector.broadcast %cst_83 : f32 to vector<16x1xf32>
    %237 = arith.divf %235, %236 : vector<16x1xf32>
    %238 = vector.broadcast %230 : vector<16x1xf32> to vector<16x32xf32>
    %239 = arith.subf %226, %238 : vector<16x32xf32>
    %cst_84 = arith.constant 9.99999996E-13 : f32
    %240 = vector.broadcast %cst_84 : f32 to vector<16x1xf32>
    %241 = arith.addf %237, %240 : vector<16x1xf32>
    %242 = math.rsqrt %241 : vector<16x1xf32>
    %243 = vector.broadcast %242 : vector<16x1xf32> to vector<16x32xf32>
    %244 = arith.mulf %239, %243 : vector<16x32xf32>
    %c0_85 = arith.constant 0 : index
    %c0_86 = arith.constant 0 : index
    %c0_87 = arith.constant 0 : index
    %245 = vector.load %arg14[%c0_85, %c0_86, %c0_87] : memref<1x1x32xf32, #tpu.memory_space<vmem>>, vector<1x1x32xf32>
    %246 = vector.shape_cast %245 : vector<1x1x32xf32> to vector<1x32xf32>
    %247 = vector.broadcast %246 : vector<1x32xf32> to vector<16x32xf32>
    %248 = arith.mulf %244, %247 : vector<16x32xf32>
    %c0_88 = arith.constant 0 : index
    %c0_89 = arith.constant 0 : index
    %c0_90 = arith.constant 0 : index
    %249 = vector.load %arg15[%c0_88, %c0_89, %c0_90] : memref<1x1x32xf32, #tpu.memory_space<vmem>>, vector<1x1x32xf32>
    %250 = vector.shape_cast %249 : vector<1x1x32xf32> to vector<1x32xf32>
    %251 = vector.broadcast %250 : vector<1x32xf32> to vector<16x32xf32>
    %252 = arith.addf %248, %251 : vector<16x32xf32>
    %253 = vector.shape_cast %252 : vector<16x32xf32> to vector<2x8x32xf32>
    %c0_91 = arith.constant 0 : index
    %c0_92 = arith.constant 0 : index
    %c0_93 = arith.constant 0 : index
    %254 = vector.load %arg17[%c0_91, %c0_92, %c0_93] : memref<2x8x32xf32, #tpu.memory_space<vmem>>, vector<2x8x32xf32>
    tpu.vector_store %arg17[%c0_91, %c0_92, %c0_93], %253 {strides = array<i32>} : memref<2x8x32xf32, #tpu.memory_space<vmem>>, vector<2x8x32xf32>,
    return
  }
  func.func @transform_0(%arg0: i32) -> (i32, i32, i32) {
    %c0_i32 = arith.constant 0 : i32
    %c0_i32_0 = arith.constant 0 : i32
    %c0_i32_1 = arith.constant 0 : i32
    %c0_i32_2 = arith.constant 0 : i32
    return %c0_i32, %c0_i32_0, %c0_i32_1 : i32, i32, i32
  }
  func.func @transform_1(%arg0: i32) -> (i32, i32, i32) {
    %c0_i32 = arith.constant 0 : i32
    %c0_i32_0 = arith.constant 0 : i32
    %c0_i32_1 = arith.constant 0 : i32
    %c0_i32_2 = arith.constant 0 : i32
    return %c0_i32, %c0_i32_0, %c0_i32_1 : i32, i32, i32
  }
  func.func @transform_2(%arg0: i32) -> (i32, i32, i32) {
    %c0_i32 = arith.constant 0 : i32
    %c0_i32_0 = arith.constant 0 : i32
    %c0_i32_1 = arith.constant 0 : i32
    %c0_i32_2 = arith.constant 0 : i32
    return %c0_i32, %c0_i32_0, %c0_i32_1 : i32, i32, i32
  }
  func.func @transform_3(%arg0: i32) -> (i32, i32, i32, i32) {
    %c0_i32 = arith.constant 0 : i32
    %c0_i32_0 = arith.constant 0 : i32
    %c0_i32_1 = arith.constant 0 : i32
    %c0_i32_2 = arith.constant 0 : i32
    return %arg0, %c0_i32, %c0_i32_0, %c0_i32_1 : i32, i32, i32, i32
  }
  func.func @transform_4(%arg0: i32) -> (i32, i32, i32, i32) {
    %c0_i32 = arith.constant 0 : i32
    %c0_i32_0 = arith.constant 0 : i32
    %c0_i32_1 = arith.constant 0 : i32
    %c0_i32_2 = arith.constant 0 : i32
    return %arg0, %c0_i32, %c0_i32_0, %c0_i32_1 : i32, i32, i32, i32
  }
  func.func @transform_5(%arg0: i32) -> (i32, i32, i32, i32) {
    %c0_i32 = arith.constant 0 : i32
    %c0_i32_0 = arith.constant 0 : i32
    %c0_i32_1 = arith.constant 0 : i32
    %c0_i32_2 = arith.constant 0 : i32
    return %arg0, %c0_i32, %c0_i32_0, %c0_i32_1 : i32, i32, i32, i32
  }
  func.func @transform_6(%arg0: i32) -> (i32, i32, i32) {
    %c0_i32 = arith.constant 0 : i32
    %c0_i32_0 = arith.constant 0 : i32
    %c0_i32_1 = arith.constant 0 : i32
    return %arg0, %c0_i32, %c0_i32_0 : i32, i32, i32
  }
  func.func @transform_7(%arg0: i32) -> (i32, i32, i32) {
    %c0_i32 = arith.constant 0 : i32
    %c0_i32_0 = arith.constant 0 : i32
    %c0_i32_1 = arith.constant 0 : i32
    return %arg0, %c0_i32, %c0_i32_0 : i32, i32, i32
  }
  func.func @transform_8(%arg0: i32) -> (i32, i32, i32) {
    %c0_i32 = arith.constant 0 : i32
    %c0_i32_0 = arith.constant 0 : i32
    %c0_i32_1 = arith.constant 0 : i32
    return %arg0, %c0_i32, %c0_i32_0 : i32, i32, i32
  }
  func.func @transform_9(%arg0: i32) -> (i32, i32, i32) {
    %c0_i32 = arith.constant 0 : i32
    %c0_i32_0 = arith.constant 0 : i32
    %c0_i32_1 = arith.constant 0 : i32
    return %arg0, %c0_i32, %c0_i32_0 : i32, i32, i32
  }
  func.func @transform_10(%arg0: i32) -> (i32, i32, i32) {
    %c0_i32 = arith.constant 0 : i32
    %c0_i32_0 = arith.constant 0 : i32
    %c0_i32_1 = arith.constant 0 : i32
    return %arg0, %c0_i32, %c0_i32_0 : i32, i32, i32
  }
  func.func @transform_11(%arg0: i32) -> (i32, i32, i32) {
    %c0_i32 = arith.constant 0 : i32
    %c0_i32_0 = arith.constant 0 : i32
    %c0_i32_1 = arith.constant 0 : i32
    return %arg0, %c0_i32, %c0_i32_0 : i32, i32, i32
  }
  func.func @transform_12(%arg0: i32) -> (i32, i32, i32) {
    %c0_i32 = arith.constant 0 : i32
    %c0_i32_0 = arith.constant 0 : i32
    %c0_i32_1 = arith.constant 0 : i32
    return %arg0, %c0_i32, %c0_i32_0 : i32, i32, i32
  }
  func.func @transform_13(%arg0: i32) -> (i32, i32, i32) {
    %c0_i32 = arith.constant 0 : i32
    %c0_i32_0 = arith.constant 0 : i32
    %c0_i32_1 = arith.constant 0 : i32
    return %arg0, %c0_i32, %c0_i32_0 : i32, i32, i32
  }
  func.func @transform_14(%arg0: i32) -> (i32, i32, i32) {
    %c0_i32 = arith.constant 0 : i32
    %c0_i32_0 = arith.constant 0 : i32
    %c0_i32_1 = arith.constant 0 : i32
    return %arg0, %c0_i32, %c0_i32_0 : i32, i32, i32
  }
  func.func @transform_15(%arg0: i32) -> (i32, i32, i32) {
    %c0_i32 = arith.constant 0 : i32
    %c0_i32_0 = arith.constant 0 : i32
    %c0_i32_1 = arith.constant 0 : i32
    return %arg0, %c0_i32, %c0_i32_0 : i32, i32, i32
  }
  func.func @transform_16(%arg0: i32) -> (i32, i32, i32) {
    %c0_i32 = arith.constant 0 : i32
    %c0_i32_0 = arith.constant 0 : i32
    %c0_i32_1 = arith.constant 0 : i32
    %c0_i32_2 = arith.constant 0 : i32
    return %c0_i32, %c0_i32_0, %c0_i32_1 : i32, i32, i32
  }
}

</mosaic_0001>

<bundles_post_ra>
// kernel: tpu_custom_call.1
= control target key start
LH: loop header
LB: loop body
LE: loop exit
PB: predicated region body
PF: predicated region fallthrough
CT: control target
= control target key end

     0   :  { %s4846_s0 = inlined_call_operand.hbm [shape: f32[2,8,32], index: 0, kind: input, shape index: {}, may-alias: {0,16}]   ;;  %s4847_s1 = inlined_call_operand.vmem [shape: f32[2,1,8], index: 1, kind: input, shape index: {}]   ;;  %s4848_s2 = inlined_call_operand.vmem [shape: s32[2,8,8], index: 2, kind: input, shape index: {}]   ;;  %s4849_s3 = inlined_call_operand.vmem [shape: bf16[2,4,32,28], index: 3, kind: input, shape index: {}]   ;;  %s4850_s4 = inlined_call_operand.vmem [shape: f32[2,4,1,28], index: 4, kind: input, shape index: {}]   ;;  %s4851_s5 = inlined_call_operand.vmem [shape: bf16[2,4,8,32], index: 5, kind: input, shape index: {}]   ;;  %s4852_s6 = inlined_call_operand.vmem [shape: f32[2,1,32], index: 6, kind: input, shape index: {}]   ;;  %s4853_s7 = inlined_call_operand.vmem [shape: f32[2,1,32], index: 7, kind: input, shape index: {}]   ;;  %s4854_s8 = inlined_call_operand.vmem [shape: f32[2,1,32], index: 8, kind: input, shape index: {}]   ;;  %s4855_s9 = inlined_call_operand.vmem [shape: bf16[2,32,64], index: 9, kind: input, shape index: {}]   ;;  %s4856_s10 = inlined_call_operand.vmem [shape: f32[2,1,64], index: 10, kind: input, shape index: {}]   ;;  %s4857_s11 = inlined_call_operand.vmem [shape: bf16[2,64,32], index: 11, kind: input, shape index: {}]   ;;  %s4858_s12 = inlined_call_operand.vmem [shape: f32[2,1,32], index: 12, kind: input, shape index: {}]   ;;  %s4859_s13 = inlined_call_operand.vmem [shape: f32[2,1,32], index: 13, kind: input, shape index: {}]   ;;  %s4860_s14 = inlined_call_operand.vmem [shape: f32[2,1,32], index: 14, kind: input, shape index: {}]   ;;  %s4861_s15 = inlined_call_operand.vmem [shape: f32[2,4,8], index: 15, kind: input, shape index: {}]   ;;  %s4862_s16 = inlined_call_operand.hbm [shape: f32[2,8,32], index: 16, kind: output, shape index: {}, may-alias: {0,16}]  }
   0x1   :  { %4873 = sst [smem:[#allocation10_spill]] %s4846_s0 }
   0x2   :  { %4874 = sst [smem:[#allocation11_spill]] %s4847_s1 }
   0x3   :  { %4875 = sst [smem:[#allocation12_spill]] %s4848_s2 }
   0x4   :  { %4876 = sst [smem:[#allocation13_spill]] %s4849_s3 }
   0x5   :  { %4877 = sst [smem:[#allocation14_spill]] %s4850_s4 }
   0x6   :  { %4878 = sst [smem:[#allocation15_spill]] %s4851_s5 }
   0x7   :  { %4879 = sst [smem:[#allocation16_spill]] %s4852_s6 }
   0x8   :  { %4880 = sst [smem:[#allocation17_spill]] %s4862_s16 }
   0x9   :  { %21 = vsyncpa [#allocation3], 0 }
   0xa   :  { %22 = vsyncpa [#allocation4], 0  ;;  %s3991_s21 = smov 0  }
   0xb LB: > { %4881 = sst [smem:[#allocation8_spill]] %s3890_s21  ;;  %s3997_s22 = sadd.s32 4294967295, %s3890_s21   ;;  %s3890_s21 = sphi %s3991_s21, %s28_s21  }
   0xc   : > { %4882 = sst [smem:[#allocation9_spill]] %s3997_s22  ;;  %p3307_p0 = scmp.ge.s32.totalorder %s3890_s21, 1 }
   0xd   : > { %p455_p1 = scmp.lt.s32.totalorder %s3890_s21, 3  ;;  %s3892_s23 = smov [#allocation2]  }
   0xe   : > { %s467_s24 = sshll.u32 %s3892_s23, 4  ;;  %p4864_p4 = scmp.eq.s32.totalorder %s3997_s22, 0  ;;  %s468_s24 = int_to_ptr.vmem [resolvable:$true] %s467_s24 }
   0xf   : > { %p4002_p3 = pnand %p3307_p0, %p455_p1  ;;  %s4885_s29 = sld [smem:[#allocation10_spill]] }
  0x11   : > { %s4883_s25 = scalar_select %p4002_p3, 1, 0 }
  0x12   : > { %p3712_p5 = pneg %p4002_p3 }
  0x14   : > { %p4011_p6 = pnand %p4864_p4, %p3712_p5 }
  0x15   : > { %s3822_s30 = scalar_lea.hbm %s4885_s29, 256 }
  0x16   : > { %p3823_p7 = scmp.ne.s32.totalorder %s4885_s29, %s3822_s30  ;;  %p3824_p8 = pneg %p4011_p6 }
  0x17   : > { %p3829_p11 = scmp.lt.u32.totalorder %s3822_s30, %s4885_s29 }
  0x18   : > { %p3825_p9 = pnand %p3824_p8, %p3823_p7 }
  0x1a   : > { %p3826_p10 = pneg %p3825_p9 }
  0x1c   : > { %p3831_p12 = pnand %p3829_p11, %p3826_p10 }
  0x1e   : > { %3834 = shalt.err (!%p3831_p12)
}
  0x1f   : > { %s3835_s20 = scalar_lea.vmem %s468_s24, 256  ;;  %p3843_p5 = scmp.lt.s32.totalorder %s468_s24, %s468_s24 }
  0x20   : > { %p3836_p13 = scmp.ne.s32.totalorder %s468_s24, %s3835_s20  ;;  %p3844_p2 = scmp.lt.s32.totalorder %s3835_s20, %s3835_s20 }
  0x22   : > { %p3838_p0 = pnand %p3836_p13, %p3824_p8  ;;  %p3845_p4 = por %p3844_p2, %p3843_p5 }
  0x24   : > { %p3839_p1 = pneg %p3838_p0 }
  0x26   : > { %p3846_p3 = pnand %p3845_p4, %p3839_p1 }
  0x28   : > { %3849 = shalt.err (!%p3846_p3)
}
  0x29   : > { %s3893_s23 = smov 128   ;;  %s3894_s27 = smov 8  }
  0x2a   : > { %3715 = dma.hbm_to_vmem [thread:$0]  (!%p4011_p6), %s4885_s29, 256, %s468_s24, [#allocation3], %s3893_s23, %s3893_s23, %s3894_s27  }
  0x2b   : > { %p4886_p7 = scmp.ne.s32.totalorder %s4883_s25, 0 }
  0x2c   : > { %p4887_p9 = scmp.eq.s32.totalorder (!%p4886_p7), %s3997_s22, 0 }
  0x2d   : > { %577 = sbr.rel (%p4886_p7) target bundleno = 2584 (0xa18), region = 84 }
  0x34   : > { %3881 = dma.done.wait (%p4887_p9), [#allocation3], 256   ;;  %p4888_p8 = pmov %p4887_p9 }
  0x35   : > { %p666_p2 = scmp.lt.s32.totalorder %s3997_s22, 1  ;;  %s4889_s3 = sld [smem:[#allocation13_spill]] }
  0x36   : > { %3883 = vsyncadd (%p4888_p8), [#allocation3], 4294967040  ;;  %s4890_s4 = sld [smem:[#allocation14_spill]]  ;;  %s4892_s5 = sld [smem:[#allocation15_spill]] }
  0x37   : > { %s4039_s30 = scalar_select %p666_p2, %s3997_s22, 1 }
  0x39   : > { %s3392_s24 = sshll.u32 %s4039_s30, 6  ;;  %s3314_s25 = sshll.u32 %s4039_s30, 2 }
  0x3a   : > { %s3393_s27 = sshll.u32 %s4039_s30, 4  ;;  %s3395_s16 = sshll.u32 %s4039_s30, 5 }
  0x3b   : > { %s4046_s18 = scalar_lea.vmem %s4889_s3, %s3392_s24  ;;  %s4084_s6 = scalar_lea.vmem %s4857_s11, %s3395_s16 }
  0x3c   : > { %s4051_s23 = scalar_lea.vmem %s4890_s4, %s3314_s25  ;;  %s4061_s1 = scalar_lea.vmem %s4892_s5, %s3393_s27 }
  0x3d   : > { %s4074_s4 = scalar_lea.vmem %s4855_s9, %s3393_s27  ;;  %s704_s26 = scalar_lea.vmem %s4858_s12, %s4039_s30 }
  0x3e   : > { %s707_s3 = scalar_lea.vmem %s4859_s13, %s4039_s30  ;;  %s710_s24 = scalar_lea.vmem %s4860_s14, %s4039_s30 }
  0x3f   : > { %s4101_s29 = scalar_lea.vmem %s4861_s15, %s3314_s25  ;;  %s4893_s5 = sld [smem:[#allocation9_spill]] }
  0x45   : > { %p4894_p3 = scmp.ne.s32.totalorder %s4893_s5, 0 }
  0x46   : > { %v720_v0 = vld [vmem:[#allocation2] sm:$0xff] (!%p4894_p3)  ;;  %vm722_vm0 = vcmask (!%p4894_p3), 261120   ;;  %v721_v1 = vld [vmem:[#allocation2 + $0x8] sm:$0xff] (!%p4894_p3) }
  0x47   : > { %719 = sbr.rel (%p4894_p3) target bundleno = 78 (0x4e), region = 92  ;;  %723 = vst.msk [vmem:[#allocation5] sm:$0xff] (!%p4894_p3), %vm722_vm0, %v720_v0  ;;  %724 = vst.msk [vmem:[#allocation5 + $0x8] sm:$0xff] (!%p4894_p3), %vm722_vm0, %v721_v1 }
  0x4e PF: > { %v3762_v2 = vld [vmem:[%s4046_s18] sm:$0xff]   ;;  %v3895_v3 = vmov 0.0   ;;  %v3763_v4 = vld [vmem:[%s4046_s18 + $0x10] sm:$0xff]   ;;  %v3764_v5 = vld [vmem:[%s4046_s18 + $0x8] sm:$0xff]   ;;  %vm3896_vm1 = vmmov 0   ;;  %vm785_vm2 = vcmask 261120   ;;  %s4900_s21 = scalar_lea.vmem %s4854_s8, %s4039_s30  ;;  %s4901_s17 = scalar_lea.vmem %s4856_s10, %s4039_s30 }
  0x4f   : > { %3476 = vmatprep.subr.bf16.mxu0 %v3895_v3  ;;  %3484 = vmatprep.subr.bf16.mxu1 %v3895_v3  ;;  %v3765_v6 = vld [vmem:[%s4046_s18 + $0x18] sm:$0xff]   ;;  %v725_v7 = vld [vmem:[#allocation5] sm:$0xff]  ;;  %v3767_v10 = vld [vmem:[%s4046_s18 + $0x30] sm:$0xff]   ;;  %v3897_v15 = vmov 26   ;;  %v3898_v16 = vmov 25   ;;  %s3899_s25 = smov 120  }
  0x50   : > { %3477 = vmatpush3.bf16.msra.mxu0 %v3762_v2  ;;  %3480 = vmatprep.mubr.msk.bf16.mxu0 %vm3896_vm1, %v3895_v3  ;;  %v727_v8 = vpack.c.bf16 %v725_v7, %v725_v7  ;;  %v3766_v9 = vld [vmem:[%s4046_s18 + $0x20] sm:$0xff]   ;;  %v3768_v11 = vld [vmem:[%s4046_s18 + $0x28] sm:$0xff]   ;;  %v3769_v12 = vld [vmem:[%s4046_s18 + $0x38] sm:$0xff]   ;;  %v3901_v7 = vmov 27   ;;  %vm1377_vm3 = vcmask 64512   ;;  %s3902_s18 = smov 112  }
  0x51   : > { %3485 = vmatpush3.bf16.msra.mxu1 %v3763_v4  ;;  %3478 = vmatprep.subr.bf16.mxu0 %v3895_v3  ;;  %v726_v13 = vld [vmem:[#allocation5 + $0x8] sm:$0xff]  ;;  %v3323_v17 = vld [vmem:[%s4051_s23] ss:$0 sm:$0xff]  ;;  %v3324_v18 = vld [vmem:[%s4051_s23 + $0x1] ss:$0 sm:$0xff]  ;;  %s4895_s16 = sld [smem:[#allocation12_spill]] }
  0x52   : > { %3486 = vmatprep.subr.bf16.mxu1 %v3895_v3  ;;  %3488 = vmatprep.mubr.msk.bf16.mxu1 %vm3896_vm1, %v3895_v3  ;;  %v728_v14 = vpack.c.bf16 %v726_v13, %v726_v13  ;;  %v3325_v31 = vld [vmem:[%s4051_s23 + $0x2] ss:$0 sm:$0xff]  ;;  %v3326_v32 = vld [vmem:[%s4051_s23 + $0x3] ss:$0 sm:$0xff]  ;;  %vm1935_vm12 = vcmask 1043456   ;;  %s4896_s27 = sld [smem:[#allocation11_spill]] }
  0x53   : > { %3748 = vset.pattern.permute.xlu0 %v3897_v15  ;;  %3742 = vset.pattern.permute.xlu1 %v3898_v16  ;;  %s4897_s0 = sld [smem:[#allocation16_spill]]  ;;  %vm3030_vm13 = vcmask 523264  }
  0x54   : > { %3479 = vmatpush3.bf16.msra.mxu0 %v3764_v5 }
  0x55   : > { %3487 = vmatpush3.bf16.msra.mxu1 %v3765_v6  ;;  %3492 = vmatprep.subr.bf16.mxu0 %v3895_v3 }
  0x56   : > { %3500 = vmatprep.subr.bf16.mxu1 %v3895_v3 }
  0x57   : > { %3481 = vmatmul.mubr.msk.bf16.vlgmr.msra.gmra.mrb[0].mxu0 %vm785_vm2, %v727_v8 }
  0x58   : > { %3489 = vmatmul.mubr.msk.bf16.vlgmr.msra.gmra.mrb[0].mxu1 %vm785_vm2, %v727_v8  ;;  %3493 = vmatpush3.bf16.msra.mxu0 %v3766_v9 }
  0x59   : > { %3501 = vmatpush3.bf16.msra.mxu1 %v3767_v10  ;;  %3494 = vmatprep.subr.bf16.mxu0 %v3895_v3  ;;  %s4898_s5 = scalar_lea.vmem %s4897_s0, %s4039_s30 }
  0x5a   : > { %3502 = vmatprep.subr.bf16.mxu1 %v3895_v3  ;;  %3496 = vmatprep.mubr.msk.bf16.mxu0 %vm3896_vm1, %v3895_v3 }
  0x5b   : > { %3504 = vmatprep.mubr.msk.bf16.mxu1 %vm3896_vm1, %v3895_v3 }
  0x5c   : > { %3495 = vmatpush3.bf16.msra.mxu0 %v3768_v11 }
  0x5d   : > { %3503 = vmatpush3.bf16.msra.mxu1 %v3769_v12  ;;  %3508 = vmatprep.subr.bf16.mxu0 %v3895_v3 }
  0x5e   : > { %3516 = vmatprep.subr.bf16.mxu1 %v3895_v3 }
  0x5f   : > { %3497 = vmatmul.mubr.msk.bf16.vlgmr.msra.gmra.mrb[4].mxu0 %vm785_vm2, %v727_v8 }
  0x60   : > { %3505 = vmatmul.mubr.msk.bf16.vlgmr.msra.gmra.mrb[4].mxu1 %vm785_vm2, %v727_v8  ;;  %3509 = vmatpush3.bf16.msra.mxu0 %v3762_v2 }
  0x61   : > { %3517 = vmatpush3.bf16.msra.mxu1 %v3763_v4  ;;  %3510 = vmatprep.subr.bf16.mxu0 %v3895_v3 }
  0x62   : > { %3518 = vmatprep.subr.bf16.mxu1 %v3895_v3  ;;  %3512 = vmatprep.mubr.msk.bf16.mxu0 %vm3896_vm1, %v3895_v3 }
  0x63   : > { %3520 = vmatprep.mubr.msk.bf16.mxu1 %vm3896_vm1, %v3895_v3 }
  0x64   : > { %3511 = vmatpush3.bf16.msra.mxu0 %v3764_v5 }
  0x65   : > { %3519 = vmatpush3.bf16.msra.mxu1 %v3765_v6  ;;  %3524 = vmatprep.subr.bf16.mxu0 %v3895_v3  ;;  %v3900_v6 = vmov 24  }
  0x66   : > { %3532 = vmatprep.subr.bf16.mxu1 %v3895_v3 }
  0x67   : > { %3513 = vmatmul.mubr.msk.bf16.vlgmr.msra.gmra.mrb[8].mxu0 %vm785_vm2, %v728_v14 }
  0x68   : > { %3521 = vmatmul.mubr.msk.bf16.vlgmr.msra.gmra.mrb[8].mxu1 %vm785_vm2, %v728_v14  ;;  %3525 = vmatpush3.bf16.msra.mxu0 %v3766_v9 }
  0x69   : > { %3533 = vmatpush3.bf16.msra.mxu1 %v3767_v10  ;;  %3526 = vmatprep.subr.bf16.mxu0 %v3895_v3 }
  0x6a   : > { %3534 = vmatprep.subr.bf16.mxu1 %v3895_v3  ;;  %3528 = vmatprep.mubr.msk.bf16.mxu0 %vm3896_vm1, %v3895_v3 }
  0x6b   : > { %3536 = vmatprep.mubr.msk.bf16.mxu1 %vm3896_vm1, %v3895_v3 }
  0x6c   : > { %3527 = vmatpush3.bf16.msra.mxu0 %v3768_v11 }
  0x6d   : > { %3535 = vmatpush3.bf16.msra.mxu1 %v3769_v12  ;;  %3540 = vmatprep.subr.bf16.mxu0 %v3895_v3 }
  0x6e   : > { %3546 = vmatprep.subr.bf16.mxu1 %v3895_v3 }
  0x6f   : > { %3529 = vmatmul.mubr.msk.bf16.vlgmr.msra.gmra.mrb[12].mxu0 %vm785_vm2, %v728_v14 }
  0x70   : > { %3537 = vmatmul.mubr.msk.bf16.vlgmr.msra.gmra.mrb[12].mxu1 %vm785_vm2, %v728_v14  ;;  %3542 = vmatprep.mubr.msk.bf16.mxu0 %vm3896_vm1, %v3895_v3 }
  0x71   : > { %3548 = vmatprep.mubr.msk.bf16.mxu1 %vm3896_vm1, %v3895_v3 }
 0x12a   : > { %v823_v19 = vpop.f32.mrb[0].mxu0 }
 0x12b   : > { %v4163_v20 = vadd.f32 %v3323_v17, %v823_v19  ;;  %v3482_v21 = vpop.f32.mrb[1].mxu0  ;;  %v875_v22 = vpop.f32.mrb[0].mxu1 }
 0x12c   : > { %v4165_v23 = vadd.f32 %v3324_v18, %v875_v22  ;;  %v826_v24 = vpop.f32.mrb[2].mxu0  ;;  %v3490_v25 = vpop.f32.mrb[1].mxu1 }
 0x12d   : > { %v3483_v26 = vpop.f32.mrb[3].mxu0  ;;  %v878_v27 = vpop.f32.mrb[2].mxu1  ;;  %v4169_v28 = vpack.c.bf16 %v4163_v20, %v4163_v20 }
 0x12e   : > { %v3491_v29 = vpop.f32.mrb[3].mxu1  ;;  %v4175_v30 = vpack.c.bf16 %v4165_v23, %v4165_v23 }
 0x12f   : > { %1375 = vrot.lane.b32.xlu0 %v4169_v28, %s3899_s25 }
 0x132   : > { %v927_v33 = vpop.f32.mrb[4].mxu0 }
 0x133   : > { %v4179_v34 = vadd.f32 %v3325_v31, %v927_v33  ;;  %v979_v35 = vpop.f32.mrb[4].mxu1  ;;  %1425 = vrot.lane.b32.xlu0 %v4175_v30, %s3899_s25  ;;  %v3498_v36 = vpop.f32.mrb[5].mxu0 }
 0x134   : > { %v4183_v37 = vadd.f32 %v3326_v32, %v979_v35  ;;  %v930_v38 = vpop.f32.mrb[6].mxu0  ;;  %v3506_v39 = vpop.f32.mrb[5].mxu1 }
 0x135   : > { %v3499_v40 = vpop.f32.mrb[7].mxu0  ;;  %v982_v41 = vpop.f32.mrb[6].mxu1  ;;  %v4187_v42 = vpack.c.bf16 %v4179_v34, %v4179_v34  ;;  %v4336_v38 = vld [vmem:[%s4895_s16] sm:$0xff] }
 0x136   : > { %v3507_v43 = vpop.f32.mrb[7].mxu1  ;;  %v4193_v44 = vpack.c.bf16 %v4183_v37, %v4183_v37  ;;  %vm1164_vm4 = vcmp.eq.s32.totalorder %v4336_v38, 1  ;;  %vm1158_vm5 = vcmp.eq.s32.totalorder %v4336_v38, 0  ;;  %vm1170_vm6 = vcmp.eq.s32.totalorder %v4336_v38, 2 }
 0x137   : > { %1474 = vrot.lane.b32.xlu1 %v4187_v42, %s3899_s25  ;;  %vm1176_vm7 = vcmp.eq.s32.totalorder %v4336_v38, 3 }
 0x13a   : > { %v1022_v45 = vpop.f32.mrb[8].mxu0 }
 0x13b   : > { %v4195_v46 = vadd.f32 %v3323_v17, %v1022_v45  ;;  %v1062_v47 = vpop.f32.mrb[8].mxu1  ;;  %1523 = vrot.lane.b32.xlu1 %v4193_v44, %s3899_s25  ;;  %v3514_v48 = vpop.f32.mrb[9].mxu0 }
 0x13c   : > { %v4199_v49 = vadd.f32 %v3324_v18, %v1062_v47  ;;  %v3522_v50 = vpop.f32.mrb[9].mxu1  ;;  %v1025_v51 = vpop.f32.mrb[10].mxu0 }
 0x13d   : > { %v1065_v52 = vpop.f32.mrb[10].mxu1  ;;  %v4203_v53 = vpack.c.bf16 %v4195_v46, %v4195_v46  ;;  %v3515_v54 = vpop.f32.mrb[11].mxu0 }
 0x13e   : > { %v3523_v55 = vpop.f32.mrb[11].mxu1  ;;  %v4207_v56 = vpack.c.bf16 %v4199_v49, %v4199_v49 }
 0x13f   : > { %1572 = vrot.lane.b32.xlu0 %v4203_v53, %s3899_s25 }
 0x140   : > { %1621 = vrot.lane.b32.xlu1 %v4207_v56, %s3899_s25 }
 0x142   : > { %v1102_v57 = vpop.f32.mrb[12].mxu0 }
 0x143   : > { %v4213_v58 = vadd.f32 %v3325_v31, %v1102_v57  ;;  %v1142_v59 = vpop.f32.mrb[12].mxu1  ;;  %v3530_v60 = vpop.f32.mrb[13].mxu0 }
 0x144   : > { %v4215_v61 = vadd.f32 %v3326_v32, %v1142_v59  ;;  %v1105_v62 = vpop.f32.mrb[14].mxu0  ;;  %v3538_v63 = vpop.f32.mrb[13].mxu1  ;;  %v4363_v60 = vld [vmem:[%s4895_s16 + $0x8] sm:$0xff] }
 0x145   : > { %v4219_v0 = vpack.c.bf16 %v4213_v58, %v4213_v58  ;;  %v3531_v1 = vpop.f32.mrb[15].mxu0  ;;  %v1145_v2 = vpop.f32.mrb[14].mxu1  ;;  %vm1159_vm8 = vcmp.eq.s32.totalorder %v4363_v60, 0  ;;  %vm1165_vm9 = vcmp.eq.s32.totalorder %v4363_v60, 1  ;;  %vm1171_vm10 = vcmp.eq.s32.totalorder %v4363_v60, 2 }
 0x146   : > { %v4223_v4 = vpack.c.bf16 %v4215_v61, %v4215_v61  ;;  %v3539_v5 = vpop.f32.mrb[15].mxu1  ;;  %vm1177_vm11 = vcmp.eq.s32.totalorder %v4363_v60, 3 }
 0x147   : > { %1670 = vrot.lane.b32.xlu0 %v4219_v0, %s3899_s25 }
 0x148   : > { %1719 = vrot.lane.b32.xlu1 %v4223_v4, %s3899_s25 }
 0x14b   : > { %1287 = vperm.xlu0 %3748, %v4179_v34  }
 0x14c   : > { %1231 = vperm.xlu1 %3742, %v4163_v20  }
 0x14f   : > { %1299 = vperm.xlu0 %3748, %v4199_v49  }
 0x150   : > { %3743 = vset.pattern.permute.xlu1 %v3900_v6 }
 0x151   : > { %1189 = vperm.xlu1 %3743, %v4165_v23  }
 0x153   : > { %3754 = vset.pattern.permute.xlu0 %v3900_v6 }
 0x154   : > { %1184 = vperm.xlu0 %3754, %v4163_v20  }
 0x155   : > { %3744 = vset.pattern.permute.xlu1 %v3897_v15 }
 0x156   : > { %1279 = vperm.xlu1 %3744, %v4163_v20  }
 0x158   : > { %1209 = vperm.xlu0 %3754, %v4199_v49  }
 0x15a   : > { %1283 = vperm.xlu1 %3744, %v4165_v23  }
 0x15c   : > { %1214 = vperm.xlu0 %3754, %v4213_v58  }
 0x15e   : > { %3745 = vset.pattern.permute.xlu1 %v3901_v7 }
 0x15f   : > { %1331 = vperm.xlu1 %3745, %v4165_v23  }
 0x160   : > { %3756 = vset.pattern.permute.xlu0 %v3898_v16 }
 0x161   : > { %1235 = vperm.xlu0 %3756, %v4165_v23  }
 0x163   : > { %3746 = vset.pattern.permute.xlu1 %v3900_v6 }
 0x164   : > { %1194 = vperm.xlu1 %3746, %v4179_v34  }
 0x165   : > { %1239 = vperm.xlu0 %3756, %v4179_v34  }
 0x168   : > { %1199 = vperm.xlu1 %3746, %v4183_v37  }
 0x169   : > { %1259 = vperm.xlu0 %3756, %v4215_v61  }
 0x16c   : > { %3747 = vset.pattern.permute.xlu1 %v3898_v16 }
 0x16d   : > { %1243 = vperm.xlu1 %3747, %v4183_v37   ;;  %3759 = vset.pattern.permute.xlu0 %v3901_v7 }
 0x16e   : > { %1327 = vperm.xlu0 %3759, %v4163_v20  }
 0x171   : > { %3749 = vset.pattern.permute.xlu1 %v3897_v15 }
 0x172   : > { %1291 = vperm.xlu1 %3749, %v4183_v37   ;;  %1339 = vperm.xlu0 %3759, %v4183_v37  }
 0x176   : > { %3750 = vset.pattern.permute.xlu1 %v3901_v7  ;;  %1351 = vperm.xlu0 %3759, %v4213_v58  }
 0x177   : > { %1335 = vperm.xlu1 %3750, %v4179_v34  }
 0x17b   : > { %3751 = vset.pattern.permute.xlu1 %v3900_v6 }
 0x17c   : > { %1204 = vperm.xlu1 %3751, %v4195_v46  }
 0x180   : > { %3752 = vset.pattern.permute.xlu1 %v3898_v16 }
 0x181   : > { %1247 = vperm.xlu1 %3752, %v4195_v46  }
 0x185   : > { %1251 = vperm.xlu1 %3752, %v4199_v49  }
 0x189   : > { %3753 = vset.pattern.permute.xlu1 %v3897_v15 }
 0x18a   : > { %1295 = vperm.xlu1 %3753, %v4195_v46  }
 0x18e   : > { %3755 = vset.pattern.permute.xlu1 %v3901_v7 }
 0x18f   : > { %1343 = vperm.xlu1 %3755, %v4195_v46  }
 0x193   : > { %1347 = vperm.xlu1 %3755, %v4199_v49  }
 0x197   : > { %3757 = vset.pattern.permute.xlu1 %v3898_v16 }
 0x198   : > { %1255 = vperm.xlu1 %3757, %v4213_v58  }
 0x19c   : > { %3758 = vset.pattern.permute.xlu1 %v3900_v6 }
 0x19d   : > { %1219 = vperm.xlu1 %3758, %v4215_v61  }
 0x1a1   : > { %3760 = vset.pattern.permute.xlu1 %v3897_v15  ;;  %v1376_v8 = vpop.permute.xlu0 %1375 }
 0x1a2   : > { %v1382_v9 = vsel %vm1377_vm3, %v1376_v8, 0  ;;  %1303 = vperm.xlu1 %3760, %v4213_v58  }
 0x1a3   : > { %3541 = vmatpush3.bf16.xpose.msra.mxu0 %v1382_v9 }
 0x1a4   : > { %3552 = vmatprep.subr.bf16.mxu0 %v3895_v3 }
 0x1a5   : > { %v1426_v10 = vpop.permute.xlu0 %1425 }
 0x1a6   : > { %v1431_v11 = vsel %vm1377_vm3, %v1426_v10, 0  ;;  %1307 = vperm.xlu1 %3760, %v4215_v61  }
 0x1a7   : > { %3547 = vmatpush3.bf16.xpose.msra.mxu1 %v1431_v11 }
 0x1a8   : > { %3558 = vmatprep.subr.bf16.mxu1 %v3895_v3 }
 0x1a9   : > { %v1475_v12 = vpop.permute.xlu1 %1474 }
 0x1aa   : > { %v1480_v13 = vsel %vm1377_vm3, %v1475_v12, 0  ;;  %3761 = vset.pattern.permute.xlu1 %v3901_v7  ;;  %3543 = vmatmul.mubr.msk.bf16.vlgmr.msra.gmra.mrb[16].mxu0 %vm1377_vm3, %v4169_v28 }
 0x1ab   : > { %1355 = vperm.xlu1 %3761, %v4215_v61   ;;  %3553 = vmatpush3.bf16.xpose.msra.mxu0 %v1480_v13 }
 0x1ac   : > { %3554 = vmatprep.mubr.msk.bf16.mxu0 %vm3896_vm1, %v3895_v3  ;;  %3564 = vmatprep.subr.bf16.mxu0 %v3895_v3 }
 0x1ad   : > { %v1524_v14 = vpop.permute.xlu1 %1523 }
 0x1ae   : > { %v1529_v15 = vsel %vm1377_vm3, %v1524_v14, 0  ;;  %3549 = vmatmul.mubr.msk.bf16.vlgmr.msra.gmra.mrb[16].mxu1 %vm1377_vm3, %v4175_v30 }
 0x1af   : > { %1930 = vrot.lane.b32.xlu1 %v4169_v28, %s3902_s18  ;;  %3559 = vmatpush3.bf16.xpose.msra.mxu1 %v1529_v15 }
 0x1b0   : > { %3560 = vmatprep.mubr.msk.bf16.mxu1 %vm3896_vm1, %v3895_v3  ;;  %3570 = vmatprep.subr.bf16.mxu1 %v3895_v3 }
 0x1b1   : > { %v1573_v16 = vpop.permute.xlu0 %1572 }
 0x1b2   : > { %v1578_v17 = vsel %vm1377_vm3, %v1573_v16, 0  ;;  %3555 = vmatmul.mubr.msk.bf16.vlgmr.msra.gmra.mrb[20].mxu0 %vm1377_vm3, %v4187_v42  ;;  %v1622_v18 = vpop.permute.xlu1 %1621 }
 0x1b3   : > { %3565 = vmatpush3.bf16.xpose.msra.mxu0 %v1578_v17  ;;  %3566 = vmatprep.mubr.msk.bf16.mxu0 %vm3896_vm1, %v3895_v3  ;;  %v1627_v19 = vsel %vm1377_vm3, %v1622_v18, 0 }
 0x1b4   : > { %3576 = vmatprep.subr.bf16.mxu0 %v3895_v3 }
 0x1b6   : > { %3561 = vmatmul.mubr.msk.bf16.vlgmr.msra.gmra.mrb[20].mxu1 %vm1377_vm3, %v4193_v44 }
 0x1b7   : > { %3571 = vmatpush3.bf16.xpose.msra.mxu1 %v1627_v19  ;;  %3572 = vmatprep.mubr.msk.bf16.mxu1 %vm3896_vm1, %v3895_v3 }
 0x1b8   : > { %3582 = vmatprep.subr.bf16.mxu1 %v3895_v3 }
 0x1b9   : > { %v1671_v20 = vpop.permute.xlu0 %1670 }
 0x1ba   : > { %v1676_v21 = vsel %vm1377_vm3, %v1671_v20, 0  ;;  %3567 = vmatmul.mubr.msk.bf16.vlgmr.msra.gmra.mrb[24].mxu0 %vm1377_vm3, %v4203_v53  ;;  %v1720_v22 = vpop.permute.xlu1 %1719 }
 0x1bb   : > { %3577 = vmatpush3.bf16.xpose.msra.mxu0 %v1676_v21  ;;  %3578 = vmatprep.mubr.msk.bf16.mxu0 %vm3896_vm1, %v3895_v3  ;;  %v1725_v23 = vsel %vm1377_vm3, %v1720_v22, 0 }
 0x1bc   : > { %3588 = vmatprep.subr.bf16.mxu0 %v3895_v3 }
 0x1be   : > { %3573 = vmatmul.mubr.msk.bf16.vlgmr.msra.gmra.mrb[24].mxu1 %vm1377_vm3, %v4207_v56 }
 0x1bf   : > { %3583 = vmatpush3.bf16.xpose.msra.mxu1 %v1725_v23  ;;  %3584 = vmatprep.mubr.msk.bf16.mxu1 %vm3896_vm1, %v3895_v3 }
 0x1c0   : > { %3594 = vmatprep.subr.bf16.mxu1 %v3895_v3 }
 0x1c2   : > { %3579 = vmatmul.mubr.msk.bf16.vlgmr.msra.gmra.mrb[28].mxu0 %vm1377_vm3, %v4219_v0 }
 0x1c3   : > { %3590 = vmatprep.mubr.msk.bf16.mxu0 %vm3896_vm1, %v3895_v3 }
 0x1c6   : > { %3585 = vmatmul.mubr.msk.bf16.vlgmr.msra.gmra.mrb[28].mxu1 %vm1377_vm3, %v4223_v4 }
 0x1c7   : > { %3596 = vmatprep.mubr.msk.bf16.mxu1 %vm3896_vm1, %v3895_v3 }
 0x1ca   : > { %v1288_v24 = vpop.permute.xlu0 %1287 }
 0x1cb   : > { %v4319_v25 = vpop.permute.xlu1 %1231  ;;  %v1312_v52 = vsel %vm1170_vm6, %v1288_v24, 0.0 }
 0x1ce   : > { %v1300_v26 = vpop.permute.xlu0 %1299 }
 0x1cf   : > { %v1315_v14 = vsel %vm1171_vm10, %v1300_v26, 0.0 }
 0x1d0   : > { %v4321_v27 = vpop.permute.xlu1 %1189 }
 0x1d3   : > { %v4323_v28 = vpop.permute.xlu0 %1184 }
 0x1d5   : > { %v4325_v29 = vpop.permute.xlu1 %1279 }
 0x1d7   : > { %v1210_v32 = vpop.permute.xlu0 %1209 }
 0x1d8   : > { %v1227_v9 = vsel %vm1159_vm8, %v1210_v32, 0.0 }
 0x1d9   : > { %v4327_v31 = vpop.permute.xlu1 %1283 }
 0x1db   : > { %v1215_v34 = vpop.permute.xlu0 %1214 }
 0x1dc   : > { %v1228_v32 = vsel %vm1159_vm8, %v1215_v34, 0.0 }
 0x1de   : > { %v4329_v33 = vpop.permute.xlu1 %1331 }
 0x1e0   : > { %v4331_v36 = vpop.permute.xlu0 %1235 }
 0x1e3   : > { %v1195_v35 = vpop.permute.xlu1 %1194 }
 0x1e4   : > { %v1240_v39 = vpop.permute.xlu0 %1239  ;;  %v1224_v47 = vsel %vm1158_vm5, %v1195_v35, 0.0 }
 0x1e5   : > { %v1264_v46 = vsel %vm1164_vm4, %v1240_v39, 0.0 }
 0x1e6   : > { %v1272_v49 = vadd.f32 %v1264_v46, %v1224_v47 }
 0x1e7   : > { %v1200_v37 = vpop.permute.xlu1 %1199 }
 0x1e8   : > { %v1225_v41 = vsel %vm1158_vm5, %v1200_v37, 0.0  ;;  %v1320_v55 = vadd.f32 %v1312_v52, %v1272_v49  ;;  %v1260_v20 = vpop.permute.xlu0 %1259  ;;  %v1262_v52 = vsel %vm1164_vm4, %v4319_v25, 0.0  ;;  %v1311_v25 = vsel %vm1170_vm6, %v4327_v31, 0.0 }
 0x1e9   : > { %v1269_v22 = vsel %vm1165_vm9, %v1260_v20, 0.0 }
 0x1ec   : > { %v1244_v40 = vpop.permute.xlu1 %1243 }
 0x1ed   : > { %v1265_v43 = vsel %vm1164_vm4, %v1244_v40, 0.0 }
 0x1ee   : > { %v1273_v45 = vadd.f32 %v1265_v43, %v1225_v41 }
 0x1f1   : > { %v1292_v48 = vpop.permute.xlu1 %1291 }
 0x1f2   : > { %v1313_v50 = vsel %vm1170_vm6, %v1292_v48, 0.0 }
 0x1f3   : > { %v4351_v51 = vadd.f32 %v1313_v50, %v1273_v45  ;;  %v1222_v50 = vsel %vm1158_vm5, %v4323_v28, 0.0 }
 0x1f6   : > { %v1336_v54 = vpop.permute.xlu1 %1335 }
 0x1f7   : > { %v1360_v57 = vsel %vm1176_vm7, %v1336_v54, 0.0  ;;  %v1263_v54 = vsel %vm1164_vm4, %v4331_v36, 0.0 }
 0x1f8   : > { %v4358_v58 = vadd.f32 %v1360_v57, %v1320_v55  ;;  %v1270_v55 = vadd.f32 %v1262_v52, %v1222_v50  ;;  %v1328_v57 = vpop.permute.xlu0 %1327 }
 0x1f9   : > { %v1358_v28 = vsel %vm1176_vm7, %v1328_v57, 0.0 }
 0x1fb   : > { %v1205_v59 = vpop.permute.xlu1 %1204 }
 0x1fc   : > { %v1226_v62 = vsel %vm1159_vm8, %v1205_v59, 0.0  ;;  %v1223_v59 = vsel %vm1158_vm5, %v4321_v27, 0.0  ;;  %v3351_v27 = vld [vmem:[%s4896_s27] ss:$0 sm:$0xff]  ;;  %v1340_v31 = vpop.permute.xlu0 %1339 }
 0x200   : > { %v1248_v61 = vpop.permute.xlu1 %1247 }
 0x201   : > { %v1266_v63 = vsel %vm1165_vm9, %v1248_v61, 0.0  ;;  %v1310_v61 = vsel %vm1170_vm6, %v4325_v29, 0.0  ;;  %v1359_v29 = vsel %vm1176_vm7, %v4329_v33, 0.0  ;;  %v1361_v33 = vsel %vm1176_vm7, %v1340_v31, 0.0 }
 0x202   : > { %v1274_v1 = vadd.f32 %v1266_v63, %v1226_v62  ;;  %v1271_v62 = vadd.f32 %v1263_v54, %v1223_v59  ;;  %v1318_v63 = vadd.f32 %v1310_v61, %v1270_v55  ;;  %v1352_v54 = vpop.permute.xlu0 %1351 }
 0x204   : > { %v1252_v2 = vpop.permute.xlu1 %1251  ;;  %v1319_v36 = vadd.f32 %v1311_v25, %v1271_v62 }
 0x205   : > { %v1267_v7 = vsel %vm1165_vm9, %v1252_v2, 0.0 }
 0x206   : > { %v1275_v10 = vadd.f32 %v1267_v7, %v1227_v9  ;;  %v1367_v9 = vadd.f32 %v1359_v29, %v1319_v36 }
 0x208   : > { %v1323_v16 = vadd.f32 %v1315_v14, %v1275_v10 }
 0x209   : > { %v1296_v5 = vpop.permute.xlu1 %1295 }
 0x20a   : > { %v1314_v6 = vsel %vm1171_vm10, %v1296_v5, 0.0 }
 0x20b   : > { %v1322_v8 = vadd.f32 %v1314_v6, %v1274_v1  ;;  %v1366_v1 = vadd.f32 %v1358_v28, %v1318_v63 }
 0x20e   : > { %v1344_v11 = vpop.permute.xlu1 %1343 }
 0x20f   : > { %v1362_v12 = vsel %vm1177_vm11, %v1344_v11, 0.0 }
 0x210   : > { %v4381_v13 = vadd.f32 %v1362_v12, %v1322_v8 }
 0x212   : > { %v1348_v15 = vpop.permute.xlu1 %1347 }
 0x213   : > { %v1363_v17 = vsel %vm1177_vm11, %v1348_v15, 0.0 }
 0x214   : > { %v4387_v18 = vadd.f32 %v1363_v17, %v1323_v16 }
 0x217   : > { %v1256_v19 = vpop.permute.xlu1 %1255 }
 0x218   : > { %v1268_v24 = vsel %vm1165_vm9, %v1256_v19, 0.0 }
 0x219   : > { %v1276_v35 = vadd.f32 %v1268_v24, %v1228_v32 }
 0x21c   : > { %v1220_v21 = vpop.permute.xlu1 %1219 }
 0x21d   : > { %v1229_v23 = vsel %vm1159_vm8, %v1220_v21, 0.0 }
 0x21e   : > { %v1277_v26 = vadd.f32 %v1269_v22, %v1229_v23 }
 0x221   : > { %v1304_v37 = vpop.permute.xlu1 %1303 }
 0x222   : > { %v1316_v39 = vsel %vm1171_vm10, %v1304_v37, 0.0 }
 0x223   : > { %v4399_v40 = vadd.f32 %v1316_v39, %v1276_v35 }
 0x225   : > { %v1308_v41 = vpop.permute.xlu1 %1307 }
 0x226   : > { %v1317_v43 = vsel %vm1171_vm10, %v1308_v41, 0.0 }
 0x227   : > { %v1325_v45 = vadd.f32 %v1317_v43, %v1277_v26  ;;  %v1369_v26 = vadd.f32 %v1361_v33, %v4351_v51 }
 0x22a   : > { %v1356_v46 = vpop.permute.xlu1 %1355 }
 0x22b   : > { %v1365_v47 = vsel %vm1177_vm11, %v1356_v46, 0.0 }
 0x22c   : > { %v4405_v48 = vadd.f32 %v1365_v47, %v1325_v45 }
 0x22e   : > { %v1931_v34 = vpop.permute.xlu1 %1930 }
 0x22f   : > { %v1937_v49 = vsel %vm1935_vm12, %v1931_v34, 0  ;;  %v3352_v34 = vld [vmem:[%s4896_s27 + $0x1] ss:$0 sm:$0xff] }
 0x230   : > { %3589 = vmatpush3.bf16.msra.mxu0 %v1937_v49 }
 0x231   : > { %3600 = vmatprep.subr.bf16.mxu0 %v3895_v3 }
 0x27d   : > { %v1418_v2 = vpop.f32.mrb[16].mxu0 }
 0x27e   : > { %v1419_v5 = vadd.f32 %v1418_v2, %v1366_v1  ;;  %v3544_v6 = vpop.f32.mrb[17].mxu0 }
 0x27f   : > { %v1421_v7 = vpop.f32.mrb[18].mxu0 }
 0x280   : > { %v3545_v8 = vpop.f32.mrb[19].mxu0  ;;  %v4435_v10 = vadd.f32 %v3351_v27, %v1419_v5 }
 0x281   : > { %v1467_v11 = vpop.f32.mrb[16].mxu1 }
 0x282   : > { %v1468_v12 = vadd.f32 %v1467_v11, %v1367_v9  ;;  %v3550_v14 = vpop.f32.mrb[17].mxu1  ;;  %v1789_v15 = vsel %vm1377_vm3, %v4435_v10, -inf }
 0x283   : > { %v1470_v16 = vpop.f32.mrb[18].mxu1  ;;  %1790 = vmax.xlane.f32.xlu1 %v1789_v15 }
 0x284   : > { %v3551_v17 = vpop.f32.mrb[19].mxu1  ;;  %v4439_v19 = vadd.f32 %v3351_v27, %v1468_v12 }
 0x285   : > { %v1516_v20 = vpop.f32.mrb[20].mxu0 }
 0x286   : > { %v1517_v21 = vadd.f32 %v1516_v20, %v4358_v58  ;;  %v3556_v22 = vpop.f32.mrb[21].mxu0  ;;  %v1792_v23 = vsel %vm1377_vm3, %v4439_v19, -inf }
 0x287   : > { %1793 = vmax.xlane.f32.xlu0 %v1792_v23  ;;  %v1519_v24 = vpop.f32.mrb[22].mxu0 }
 0x288   : > { %v3557_v32 = vpop.f32.mrb[23].mxu0  ;;  %v4447_v35 = vadd.f32 %v3351_v27, %v1517_v21 }
 0x289   : > { %v1565_v37 = vpop.f32.mrb[20].mxu1 }
 0x28a   : > { %v1566_v39 = vadd.f32 %v1565_v37, %v1369_v26  ;;  %v3562_v41 = vpop.f32.mrb[21].mxu1  ;;  %v1795_v43 = vsel %vm1377_vm3, %v4447_v35, -inf }
 0x28b   : > { %v1568_v45 = vpop.f32.mrb[22].mxu1  ;;  %1796 = vmax.xlane.f32.xlu0 %v1795_v43 }
 0x28c   : > { %v3563_v58 = vpop.f32.mrb[23].mxu1  ;;  %v4451_v46 = vadd.f32 %v3351_v27, %v1566_v39 }
 0x28d   : > { %v1614_v47 = vpop.f32.mrb[24].mxu0 }
 0x28e   : > { %v1615_v51 = vadd.f32 %v1614_v47, %v4381_v13  ;;  %v3568_v49 = vpop.f32.mrb[25].mxu0  ;;  %v1798_v50 = vsel %vm1377_vm3, %v4451_v46, -inf  ;;  %v1364_v13 = vsel %vm1177_vm11, %v1352_v54, 0.0 }
 0x28f   : > { %1799 = vmax.xlane.f32.xlu1 %v1798_v50  ;;  %v1617_v52 = vpop.f32.mrb[26].mxu0  ;;  %v1372_v36 = vadd.f32 %v1364_v13, %v4399_v40 }
 0x290   : > { %v3569_v55 = vpop.f32.mrb[27].mxu0  ;;  %v4459_v57 = vadd.f32 %v3352_v34, %v1615_v51 }
 0x291   : > { %v1663_v59 = vpop.f32.mrb[24].mxu1 }
 0x292   : > { %v1664_v61 = vadd.f32 %v1663_v59, %v4387_v18  ;;  %v3574_v62 = vpop.f32.mrb[25].mxu1  ;;  %v1801_v28 = vsel %vm1377_vm3, %v4459_v57, -inf }
 0x293   : > { %v1666_v63 = vpop.f32.mrb[26].mxu1  ;;  %1802 = vmax.xlane.f32.xlu0 %v1801_v28 }
 0x294   : > { %v3575_v25 = vpop.f32.mrb[27].mxu1  ;;  %v1786_v1 = vadd.f32 %v3352_v34, %v1664_v61 }
 0x295   : > { %v1712_v2 = vpop.f32.mrb[28].mxu0 }
 0x296   : > { %v1713_v27 = vadd.f32 %v1712_v2, %v1372_v36  ;;  %v3580_v5 = vpop.f32.mrb[29].mxu0  ;;  %v1804_v6 = vsel %vm1377_vm3, %v1786_v1, -inf }
 0x297   : > { %1805 = vmax.xlane.f32.xlu1 %v1804_v6  ;;  %v1715_v18 = vpop.f32.mrb[30].mxu0 }
 0x298   : > { %v3581_v29 = vpop.f32.mrb[31].mxu0  ;;  %v1787_v7 = vadd.f32 %v3352_v34, %v1713_v27 }
 0x299   : > { %v1761_v8 = vpop.f32.mrb[28].mxu1 }
 0x29a   : > { %v1762_v9 = vadd.f32 %v1761_v8, %v4405_v48  ;;  %v3586_v11 = vpop.f32.mrb[29].mxu1  ;;  %v1807_v31 = vsel %vm1377_vm3, %v1787_v7, -inf }
 0x29b   : > { %v1764_v12 = vpop.f32.mrb[30].mxu1  ;;  %1808 = vmax.xlane.f32.xlu0 %v1807_v31 }
 0x29c   : > { %v3587_v14 = vpop.f32.mrb[31].mxu1  ;;  %v1788_v40 = vadd.f32 %v3352_v34, %v1762_v9 }
 0x29e   : > { %v1810_v15 = vsel %vm1377_vm3, %v1788_v40, -inf }
 0x2a8   : > { %2027 = vrot.lane.b32.xlu1 %v4187_v42, %s3902_s18 }
 0x2b1   : > { %1979 = vrot.lane.b32.xlu0 %v4175_v30, %s3902_s18 }
 0x2cc   : > { %1811 = vmax.xlane.f32.xlu1 %v1810_v15 }
 0x2dd   : > { %2075 = vrot.lane.b32.xlu1 %v4193_v44, %s3902_s18 }
 0x310   : > { %v1791_v48 = vpop.xlane.xlu1 %1790 }
 0x311   : > { %v1813_v16 = vsub.f32 %v4435_v10, %v1791_v48 }
 0x313   : > { %v1821_v17 = vmul.f32 1.442695, %v1813_v16 }
 0x314   : > { %v1794_v33 = vpop.xlane.xlu0 %1793 }
 0x315   : > { %3776 = vpow2.f32 %v1821_v17  ;;  %v1814_v20 = vsub.f32 %v4439_v19, %v1794_v33 }
 0x317   : > { %v1823_v21 = vmul.f32 1.442695, %v1814_v20 }
 0x318   : > { %v1797_v30 = vpop.xlane.xlu0 %1796 }
 0x319   : > { %3778 = vpow2.f32 %v1823_v21  ;;  %v1815_v32 = vsub.f32 %v4447_v35, %v1797_v30 }
 0x31b   : > { %v1825_v41 = vmul.f32 1.442695, %v1815_v32 }
 0x31c   : > { %v1800_v37 = vpop.xlane.xlu1 %1799 }
 0x31d   : > { %v1816_v39 = vsub.f32 %v4451_v46, %v1800_v37  ;;  %3780 = vpow2.f32 %v1825_v41 }
 0x31f   : > { %v4479_v42 = vpop.eup %3776  ;;  %v1827_v58 = vmul.f32 1.442695, %v1816_v39 }
 0x320   : > { %v1837_v22 = vsel %vm1377_vm3, %v4479_v42, 0.0  ;;  %v1803_v44 = vpop.xlane.xlu0 %1802 }
 0x321   : > { %1838 = vadd.xlane.f32.xlu0 %v1837_v22  ;;  %v1817_v43 = vsub.f32 %v4459_v57, %v1803_v44  ;;  %3782 = vpow2.f32 %v1827_v58 }
 0x323   : > { %v4483_v23 = vpop.eup %3778  ;;  %v1829_v34 = vmul.f32 1.442695, %v1817_v43 }
 0x324   : > { %v1840_v10 = vsel %vm1377_vm3, %v4483_v23, 0.0  ;;  %v1806_v45 = vpop.xlane.xlu1 %1805 }
 0x325   : > { %1841 = vadd.xlane.f32.xlu1 %v1840_v10  ;;  %v1818_v47 = vsub.f32 %v1786_v1, %v1806_v45  ;;  %3784 = vpow2.f32 %v1829_v34 }
 0x327   : > { %v1831_v49 = vmul.f32 1.442695, %v1818_v47 }
 0x328   : > { %v1809_v24 = vpop.xlane.xlu0 %1808  ;;  %v2028_v46 = vpop.permute.xlu1 %2027 }
 0x329   : > { %v1819_v51 = vsub.f32 %v1787_v7, %v1809_v24  ;;  %3786 = vpow2.f32 %v1831_v49 }
 0x32c   : > { %v1980_v26 = vpop.permute.xlu0 %1979 }
 0x32d   : > { %v1985_v19 = vsel %vm1935_vm12, %v1980_v26, 0 }
 0x32e   : > { %3595 = vmatpush3.bf16.msra.mxu1 %v1985_v19 }
 0x32f   : > { %3606 = vmatprep.subr.bf16.mxu1 %v3895_v3 }
 0x336   : > { %2123 = vrot.lane.b32.xlu1 %v4203_v53, %s3902_s18  ;;  %v1833_v53 = vmul.f32 1.442695, %v1819_v51 }
 0x337   : > { %2171 = vrot.lane.b32.xlu0 %v4207_v56, %s3902_s18  ;;  %v4496_v56 = vpop.eup %3780 }
 0x338   : > { %3788 = vpow2.f32 %v1833_v53  ;;  %v4498_v35 = vpop.eup %3782  ;;  %v1843_v50 = vsel %vm1377_vm3, %v4496_v56, 0.0 }
 0x339   : > { %v4502_v52 = vpop.eup %3784  ;;  %v1846_v57 = vsel %vm1377_vm3, %v4498_v35, 0.0 }
 0x33a   : > { %v4504_v54 = vpop.eup %3786  ;;  %v1849_v59 = vsel %vm1377_vm3, %v4502_v52, 0.0 }
 0x33b   : > { %v1852_v13 = vsel %vm1377_vm3, %v4504_v54, 0.0 }
 0x342   : > { %v4510_v61 = vpop.eup %3788 }
 0x343   : > { %v1855_v63 = vsel %vm1377_vm3, %v4510_v61, 0.0 }
 0x356   : > { %1844 = vadd.xlane.f32.xlu0 %v1843_v50 }
 0x359   : > { %v1812_v55 = vpop.xlane.xlu1 %1811 }
 0x35a   : > { %v1820_v62 = vsub.f32 %v1788_v40, %v1812_v55  ;;  %1847 = vadd.xlane.f32.xlu1 %v1846_v57  ;;  %1850 = vadd.xlane.f32.xlu0 %v1849_v59 }
 0x35c   : > { %v1835_v28 = vmul.f32 1.442695, %v1820_v62 }
 0x35d   : > { %v2076_v1 = vpop.permute.xlu1 %2075 }
 0x35e   : > { %3790 = vpow2.f32 %v1835_v28  ;;  %1853 = vadd.xlane.f32.xlu1 %v1852_v13  ;;  %1856 = vadd.xlane.f32.xlu0 %v1855_v63  ;;  %v2081_v40 = vsel %vm1935_vm12, %v2076_v1, 0 }
 0x368   : > { %v4516_v25 = vpop.eup %3790 }
 0x369   : > { %v1858_v36 = vsel %vm1377_vm3, %v4516_v25, 0.0 }
 0x36a   : > { %1859 = vadd.xlane.f32.xlu0 %v1858_v36 }
 0x36f   : > { %2219 = vrot.lane.b32.xlu1 %v4219_v0, %s3902_s18  ;;  %v2033_v0 = vsel %vm1935_vm12, %v2028_v46, 0 }
 0x380   : > { %2267 = vrot.lane.b32.xlu0 %v4223_v4, %s3902_s18 }
 0x3ae   : > { %v1839_v2 = vpop.xlane.xlu0 %1838 }
 0x3af   : > { %3792 = vrcp.f32 %v1839_v2 }
 0x3b2   : > { %v1842_v27 = vpop.xlane.xlu1 %1841 }
 0x3b3   : > { %3794 = vrcp.f32 %v1842_v27 }
 0x3b6   : > { %v2124_v44 = vpop.permute.xlu1 %2123 }
 0x3b9   : > { %v3793_v5 = vpop.eup %3792 }
 0x3ba   : > { %v1869_v6 = vmul.f32 %v3793_v5, %v4479_v42 }
 0x3bc   : > { %v1885_v18 = vsel %vm1158_vm5, %v1869_v6, 0.0  ;;  %v1877_v29 = vpack.c.bf16 %v1869_v6, %v1869_v6  ;;  %v2315_v15 = vsel %vm1164_vm4, %v1869_v6, 0.0  ;;  %v2368_v33 = vsel %vm1170_vm6, %v1869_v6, 0.0 }
 0x3bd   : > { %v3795_v7 = vpop.eup %3794  ;;  %v1893_v8 = vsel %vm1377_vm3, %v1885_v18, 0.0  ;;  %v2323_v16 = vsel %vm1377_vm3, %v2315_v15, 0.0  ;;  %v2376_v20 = vsel %vm1377_vm3, %v2368_v33, 0.0  ;;  %v2421_v21 = vsel %vm1176_vm7, %v1869_v6, 0.0 }
 0x3be   : > { %v1870_v9 = vmul.f32 %v3795_v7, %v4483_v23  ;;  %1894 = vadd.xlane.f32.xlu1 %v1893_v8  ;;  %3591 = vmatmul.mubr.msk.bf16.vlgmr.msra.gmra.mrb[32].mxu0 %vm1377_vm3, %v1877_v29  ;;  %v2429_v42 = vsel %vm1377_vm3, %v2421_v21, 0.0  ;;  %v2172_v23 = vpop.permute.xlu0 %2171 }
 0x3bf   : > { %3601 = vmatpush3.bf16.msra.mxu0 %v2033_v0  ;;  %3602 = vmatprep.mubr.msk.bf16.mxu0 %vm3896_vm1, %v3895_v3  ;;  %v2177_v62 = vsel %vm1935_vm12, %v2172_v23, 0 }
 0x3c0   : > { %v1886_v4 = vsel %vm1158_vm5, %v1870_v9, 0.0  ;;  %v1878_v11 = vpack.c.bf16 %v1870_v9, %v1870_v9  ;;  %v2316_v31 = vsel %vm1164_vm4, %v1870_v9, 0.0  ;;  %3612 = vmatprep.subr.bf16.mxu0 %v3895_v3  ;;  %v2369_v48 = vsel %vm1170_vm6, %v1870_v9, 0.0 }
 0x3c1   : > { %v1896_v12 = vsel %vm1377_vm3, %v1886_v4, 0.0  ;;  %v2326_v14 = vsel %vm1377_vm3, %v2316_v31, 0.0  ;;  %v2379_v17 = vsel %vm1377_vm3, %v2369_v48, 0.0  ;;  %v2422_v30 = vsel %vm1176_vm7, %v1870_v9, 0.0 }
 0x3c2   : > { %1897 = vadd.xlane.f32.xlu0 %v1896_v12  ;;  %3597 = vmatmul.mubr.msk.bf16.vlgmr.msra.gmra.mrb[32].mxu1 %vm1377_vm3, %v1878_v11  ;;  %v2432_v22 = vsel %vm1377_vm3, %v2422_v30, 0.0 }
 0x3c3   : > { %3607 = vmatpush3.bf16.msra.mxu1 %v2081_v40  ;;  %2327 = vadd.xlane.f32.xlu1 %v2326_v14 }
 0x3c4   : > { %3608 = vmatprep.mubr.msk.bf16.mxu1 %vm3896_vm1, %v3895_v3  ;;  %3618 = vmatprep.subr.bf16.mxu1 %v3895_v3 }
 0x3c6   : > { %2324 = vadd.xlane.f32.xlu0 %v2323_v16 }
 0x3c7   : > { %2380 = vadd.xlane.f32.xlu1 %v2379_v17 }
 0x3ca   : > { %2377 = vadd.xlane.f32.xlu0 %v2376_v20 }
 0x3ce   : > { %2430 = vadd.xlane.f32.xlu0 %v2429_v42 }
 0x3d2   : > { %2433 = vadd.xlane.f32.xlu0 %v2432_v22 }
 0x3e3   : > { %v1845_v10 = vpop.xlane.xlu0 %1844 }
 0x3e4   : > { %3796 = vrcp.f32 %v1845_v10 }
 0x3e7   : > { %v1848_v24 = vpop.xlane.xlu1 %1847  ;;  %v1851_v26 = vpop.xlane.xlu0 %1850 }
 0x3e8   : > { %3798 = vrcp.f32 %v1848_v24 }
 0x3e9   : > { %3800 = vrcp.f32 %v1851_v26 }
 0x3eb   : > { %v1854_v19 = vpop.xlane.xlu1 %1853  ;;  %v1857_v37 = vpop.xlane.xlu0 %1856 }
 0x3ec   : > { %3802 = vrcp.f32 %v1854_v19 }
 0x3ed   : > { %3804 = vrcp.f32 %v1857_v37 }
 0x3ee   : > { %v3797_v32 = vpop.eup %3796 }
 0x3ef   : > { %v1871_v39 = vmul.f32 %v3797_v32, %v4496_v56  ;;  %v2129_v56 = vsel %vm1935_vm12, %v2124_v44, 0  ;;  %v2220_v36 = vpop.permute.xlu1 %2219 }
 0x3f0   : > { %v2225_v18 = vsel %vm1935_vm12, %v2220_v36, 0 }
 0x3f1   : > { %v2317_v41 = vsel %vm1164_vm4, %v1871_v39, 0.0  ;;  %v1887_v43 = vsel %vm1158_vm5, %v1871_v39, 0.0  ;;  %v1879_v45 = vpack.c.bf16 %v1871_v39, %v1871_v39  ;;  %v2370_v53 = vsel %vm1170_vm6, %v1871_v39, 0.0 }
 0x3f2   : > { %v3799_v58 = vpop.eup %3798  ;;  %v2329_v47 = vsel %vm1377_vm3, %v2317_v41, 0.0  ;;  %v1899_v34 = vsel %vm1377_vm3, %v1887_v43, 0.0  ;;  %v2382_v57 = vsel %vm1377_vm3, %v2370_v53, 0.0  ;;  %v2423_v13 = vsel %vm1176_vm7, %v1871_v39, 0.0  ;;  %v2475_v53 = vld [vmem:[%s4061_s1 + $0x4] sm:$0xf] }
 0x3f3   : > { %v3801_v51 = vpop.eup %3800  ;;  %v1872_v49 = vmul.f32 %v3799_v58, %v4498_v35  ;;  %2330 = vadd.xlane.f32.xlu0 %v2329_v47  ;;  %1900 = vadd.xlane.f32.xlu1 %v1899_v34  ;;  %v2435_v1 = vsel %vm1377_vm3, %v2423_v13, 0.0  ;;  %v4677_v13 = vld [vmem:[%s4101_s29] ss:$0 sm:$0xff] }
 0x3f4   : > { %3603 = vmatmul.mubr.msk.bf16.vlgmr.msra.gmra.mrb[36].mxu0 %vm1377_vm3, %v1879_v45  ;;  %v1873_v35 = vmul.f32 %v3801_v51, %v4502_v52  ;;  %v2474_v51 = vld [vmem:[%s4061_s1] sm:$0xf] }
 0x3f5   : > { %3613 = vmatpush3.bf16.msra.mxu0 %v2129_v56  ;;  %v1880_v46 = vpack.c.bf16 %v1872_v49, %v1872_v49  ;;  %v1888_v50 = vsel %vm1158_vm5, %v1872_v49, 0.0  ;;  %3614 = vmatprep.mubr.msk.bf16.mxu0 %vm3896_vm1, %v3895_v3  ;;  %v2318_v52 = vsel %vm1164_vm4, %v1872_v49, 0.0  ;;  %v2424_v6 = vsel %vm1176_vm7, %v1872_v49, 0.0 }
 0x3f6   : > { %v3803_v55 = vpop.eup %3802  ;;  %v1902_v59 = vsel %vm1377_vm3, %v1888_v50, 0.0  ;;  %3624 = vmatprep.subr.bf16.mxu0 %v3895_v3  ;;  %v1881_v2 = vpack.c.bf16 %v1873_v35, %v1873_v35  ;;  %v2332_v5 = vsel %vm1377_vm3, %v2318_v52, 0.0  ;;  %v2371_v29 = vsel %vm1170_vm6, %v1872_v49, 0.0 }
 0x3f7   : > { %3609 = vmatmul.mubr.msk.bf16.vlgmr.msra.gmra.mrb[36].mxu1 %vm1377_vm3, %v1880_v46  ;;  %2383 = vadd.xlane.f32.xlu0 %v2382_v57  ;;  %v1860_v28 = vpop.xlane.xlu0 %1859  ;;  %v1874_v63 = vmul.f32 %v3803_v55, %v4504_v54  ;;  %v3805_v27 = vpop.eup %3804  ;;  %v2438_v0 = vsel %vm1377_vm3, %v2424_v6, 0.0  ;;  %v2385_v4 = vsel %vm1377_vm3, %v2371_v29, 0.0  ;;  %v2319_v38 = vsel %vm1165_vm9, %v1873_v35, 0.0  ;;  %v4685_v6 = vld [vmem:[%s4101_s29 + $0x2] ss:$0 sm:$0xff] }
 0x3f8   : > { %3619 = vmatpush3.bf16.msra.mxu1 %v2177_v62  ;;  %1903 = vadd.xlane.f32.xlu1 %v1902_v59  ;;  %3806 = vrcp.f32 %v1860_v28  ;;  %v1875_v8 = vmul.f32 %v3805_v27, %v4510_v61  ;;  %v1889_v11 = vsel %vm1159_vm8, %v1873_v35, 0.0  ;;  %v2335_v31 = vsel %vm1377_vm3, %v2319_v38, 0.0 }
 0x3f9   : > { %3620 = vmatprep.mubr.msk.bf16.mxu1 %vm3896_vm1, %v3895_v3  ;;  %3630 = vmatprep.subr.bf16.mxu1 %v3895_v3  ;;  %v1882_v7 = vpack.c.bf16 %v1874_v63, %v1874_v63  ;;  %v1905_v40 = vsel %vm1377_vm3, %v1889_v11, 0.0  ;;  %v2372_v15 = vsel %vm1171_vm10, %v1873_v35, 0.0  ;;  %v1890_v48 = vsel %vm1159_vm8, %v1874_v63, 0.0 }
 0x3fa   : > { %v1883_v12 = vpack.c.bf16 %v1875_v8, %v1875_v8  ;;  %v2388_v17 = vsel %vm1377_vm3, %v2372_v15, 0.0  ;;  %v2425_v33 = vsel %vm1177_vm11, %v1873_v35, 0.0  ;;  %v2320_v20 = vsel %vm1165_vm9, %v1874_v63, 0.0  ;;  %v2476_v15 = vld [vmem:[%s4061_s1 + $0x8] sm:$0xf] }
 0x3fb   : > { %2436 = vadd.xlane.f32.xlu0 %v2435_v1  ;;  %v2268_v54 = vpop.permute.xlu0 %2267  ;;  %v2441_v21 = vsel %vm1377_vm3, %v2425_v33, 0.0  ;;  %v2338_v42 = vsel %vm1377_vm3, %v2320_v20, 0.0  ;;  %v2426_v30 = vsel %vm1177_vm11, %v1874_v63, 0.0  ;;  %v2373_v22 = vsel %vm1171_vm10, %v1874_v63, 0.0  ;;  %v4681_v63 = vld [vmem:[%s4101_s29 + $0x1] ss:$0 sm:$0xff] }
 0x3fc   : > { %2333 = vadd.xlane.f32.xlu1 %v2332_v5  ;;  %3615 = vmatmul.mubr.msk.bf16.vlgmr.msra.gmra.mrb[40].mxu0 %vm1377_vm3, %v1881_v2  ;;  %v2273_v9 = vsel %vm1935_vm12, %v2268_v54, 0  ;;  %v2444_v23 = vsel %vm1377_vm3, %v2426_v30, 0.0  ;;  %v2391_v44 = vsel %vm1377_vm3, %v2373_v22, 0.0  ;;  %v2321_v10 = vsel %vm1165_vm9, %v1875_v8, 0.0  ;;  %v2477_v22 = vld [vmem:[%s4061_s1 + $0xc] sm:$0xf] }
 0x3fd   : > { %3625 = vmatpush3.bf16.msra.mxu0 %v2225_v18  ;;  %3626 = vmatprep.mubr.msk.bf16.mxu0 %vm3896_vm1, %v3895_v3  ;;  %v1891_v24 = vsel %vm1159_vm8, %v1875_v8, 0.0  ;;  %v2341_v26 = vsel %vm1377_vm3, %v2321_v10, 0.0  ;;  %v2374_v32 = vsel %vm1171_vm10, %v1875_v8, 0.0  ;;  %v2427_v43 = vsel %vm1177_vm11, %v1875_v8, 0.0  ;;  %v4688_v18 = vld [vmem:[%s4101_s29 + $0x3] ss:$0 sm:$0xff] }
 0x3fe   : > { %3636 = vmatprep.subr.bf16.mxu0 %v3895_v3  ;;  %v1911_v19 = vsel %vm1377_vm3, %v1891_v24, 0.0  ;;  %v2394_v39 = vsel %vm1377_vm3, %v2374_v32, 0.0  ;;  %v2447_v58 = vsel %vm1377_vm3, %v2427_v43, 0.0  ;;  %v4662_v49 = vsel %vm1935_vm12, %v2474_v51, 0 }
 0x3ff   : > { %3621 = vmatmul.mubr.msk.bf16.vlgmr.msra.gmra.mrb[40].mxu1 %vm1377_vm3, %v1882_v7  ;;  %2439 = vadd.xlane.f32.xlu0 %v2438_v0  ;;  %v4668_v46 = vsel %vm1935_vm12, %v2475_v53, 0  ;;  %v4698_v30 = vsel %vm1935_vm12, %v2476_v15, 0  ;;  %v4706_v24 = vsel %vm1935_vm12, %v2477_v22, 0 }
 0x400   : > { %2386 = vadd.xlane.f32.xlu1 %v2385_v4  ;;  %3631 = vmatpush3.bf16.msra.mxu1 %v2273_v9 }
 0x401   : > { %3632 = vmatprep.mubr.msk.bf16.mxu1 %vm3896_vm1, %v3895_v3  ;;  %3642 = vmatprep.subr.bf16.mxu1 %v3895_v3 }
 0x402   : > { %v3807_v61 = vpop.eup %3806 }
 0x403   : > { %v1876_v14 = vmul.f32 %v3807_v61, %v4516_v25  ;;  %2336 = vadd.xlane.f32.xlu0 %v2335_v31  ;;  %v1908_v25 = vsel %vm1377_vm3, %v1890_v48, 0.0 }
 0x404   : > { %1906 = vadd.xlane.f32.xlu1 %v1905_v40  ;;  %3627 = vmatmul.mubr.msk.bf16.vlgmr.msra.gmra.mrb[44].mxu0 %vm1377_vm3, %v1883_v12 }
 0x405   : > { %v1884_v16 = vpack.c.bf16 %v1876_v14, %v1876_v14  ;;  %3638 = vmatprep.mubr.msk.bf16.mxu0 %vm3896_vm1, %v3895_v3  ;;  %v1892_v37 = vsel %vm1159_vm8, %v1876_v14, 0.0  ;;  %v2322_v45 = vsel %vm1165_vm9, %v1876_v14, 0.0  ;;  %v2375_v34 = vsel %vm1171_vm10, %v1876_v14, 0.0  ;;  %3637 = vmatpush3.bf16.msra.mxu0 %v4662_v49 }
 0x406   : > { %v1914_v41 = vsel %vm1377_vm3, %v1892_v37, 0.0  ;;  %v2344_v47 = vsel %vm1377_vm3, %v2322_v45, 0.0  ;;  %v2397_v56 = vsel %vm1377_vm3, %v2375_v34, 0.0  ;;  %3648 = vmatprep.subr.bf16.mxu0 %v3895_v3  ;;  %v2428_v50 = vsel %vm1177_vm11, %v1876_v14, 0.0 }
 0x407   : > { %2389 = vadd.xlane.f32.xlu0 %v2388_v17  ;;  %3633 = vmatmul.mubr.msk.bf16.vlgmr.msra.gmra.mrb[44].mxu1 %vm1377_vm3, %v1884_v16  ;;  %v2450_v55 = vsel %vm1377_vm3, %v2428_v50, 0.0 }
 0x408   : > { %1909 = vadd.xlane.f32.xlu1 %v1908_v25  ;;  %3644 = vmatprep.mubr.msk.bf16.mxu1 %vm3896_vm1, %v3895_v3 }
 0x409   : > { %3643 = vmatpush3.bf16.msra.mxu1 %v4668_v46 }
 0x40a   : > { %3654 = vmatprep.subr.bf16.mxu1 %v3895_v3 }
 0x40b   : > { %2442 = vadd.xlane.f32.xlu0 %v2441_v21 }
 0x40c   : > { %2339 = vadd.xlane.f32.xlu1 %v2338_v42 }
 0x40f   : > { %2445 = vadd.xlane.f32.xlu0 %v2444_v23 }
 0x410   : > { %2392 = vadd.xlane.f32.xlu1 %v2391_v44 }
 0x413   : > { %2342 = vadd.xlane.f32.xlu0 %v2341_v26 }
 0x414   : > { %1912 = vadd.xlane.f32.xlu1 %v1911_v19 }
 0x417   : > { %2395 = vadd.xlane.f32.xlu0 %v2394_v39 }
 0x418   : > { %1915 = vadd.xlane.f32.xlu1 %v1914_v41 }
 0x41b   : > { %2448 = vadd.xlane.f32.xlu0 %v2447_v58 }
 0x41c   : > { %2345 = vadd.xlane.f32.xlu1 %v2344_v47 }
 0x420   : > { %2398 = vadd.xlane.f32.xlu1 %v2397_v56 }
 0x424   : > { %2451 = vadd.xlane.f32.xlu1 %v2450_v55 }
 0x44b   : > { %v1895_v57 = vpop.xlane.xlu1 %1894 }
 0x44c   : > { %v1922_v60 = vmul.f32 %v4677_v13, %v1895_v57 }
 0x44f   : > { %v1898_v35 = vpop.xlane.xlu0 %1897 }
 0x450   : > { %v2328_v62 = vpop.xlane.xlu1 %2327  ;;  %v1923_v7 = vmul.f32 %v4677_v13, %v1898_v35 }
 0x451   : > { %v2353_v38 = vmul.f32 %v4681_v63, %v2328_v62 }
 0x453   : > { %v2325_v59 = vpop.xlane.xlu0 %2324 }
 0x454   : > { %v2381_v52 = vpop.xlane.xlu1 %2380  ;;  %v2352_v2 = vmul.f32 %v4681_v63, %v2325_v59 }
 0x455   : > { %v2406_v48 = vmul.f32 %v4685_v6, %v2381_v52 }
 0x457   : > { %v2378_v28 = vpop.xlane.xlu0 %2377 }
 0x458   : > { %v2405_v8 = vmul.f32 %v4685_v6, %v2378_v28 }
 0x45b   : > { %v2431_v36 = vpop.xlane.xlu0 %2430 }
 0x45c   : > { %v2458_v11 = vmul.f32 %v4688_v18, %v2431_v36 }
 0x45f   : > { %v2434_v14 = vpop.xlane.xlu0 %2433 }
 0x460   : > { %v2459_v20 = vmul.f32 %v4688_v18, %v2434_v14 }
 0x480   : > { %v1901_v54 = vpop.xlane.xlu1 %1900  ;;  %v2331_v44 = vpop.xlane.xlu0 %2330 }
 0x481   : > { %v1924_v56 = vmul.f32 %v4677_v13, %v1901_v54  ;;  %v2354_v35 = vmul.f32 %v4681_v63, %v2331_v44 }
 0x484   : > { %v2384_v19 = vpop.xlane.xlu0 %2383 }
 0x485   : > { %v1904_v33 = vpop.xlane.xlu1 %1903 }
 0x486   : > { %v1925_v62 = vmul.f32 %v4677_v13, %v1904_v33 }
 0x488   : > { %v2437_v37 = vpop.xlane.xlu0 %2436 }
 0x489   : > { %v2334_v26 = vpop.xlane.xlu1 %2333  ;;  %v2460_v54 = vmul.f32 %v4688_v18, %v2437_v37 }
 0x48c   : > { %v2440_v41 = vpop.xlane.xlu0 %2439 }
 0x48d   : > { %v2387_v32 = vpop.xlane.xlu1 %2386 }
 0x490   : > { %v2337_v45 = vpop.xlane.xlu0 %2336 }
 0x491   : > { %v1973_v1 = vpop.f32.mrb[32].mxu0  ;;  %v1907_v39 = vpop.xlane.xlu1 %1906 }
 0x492   : > { %v1974_v27 = vadd.f32 %v1973_v1, %v1922_v60  ;;  %v3592_v5 = vpop.f32.mrb[33].mxu0  ;;  %v2407_v60 = vmul.f32 %v4685_v6, %v2384_v19 }
 0x493   : > { %v1976_v29 = vpop.f32.mrb[34].mxu0 }
 0x494   : > { %v2360_v0 = vadd.f32 %v2352_v2, %v1974_v27  ;;  %v3593_v9 = vpop.f32.mrb[35].mxu0  ;;  %v2390_v47 = vpop.xlane.xlu0 %2389  ;;  %v2355_v27 = vmul.f32 %v4681_v63, %v2334_v26 }
 0x495   : > { %v2021_v4 = vpop.f32.mrb[32].mxu1  ;;  %v1910_v43 = vpop.xlane.xlu1 %1909 }
 0x496   : > { %v2413_v61 = vadd.f32 %v2405_v8, %v2360_v0  ;;  %v2022_v31 = vadd.f32 %v2021_v4, %v1923_v7  ;;  %v3598_v12 = vpop.f32.mrb[33].mxu1  ;;  %v2408_v0 = vmul.f32 %v4685_v6, %v2387_v32 }
 0x497   : > { %v2024_v40 = vpop.f32.mrb[34].mxu1 }
 0x498   : > { %v2466_v16 = vadd.f32 %v2458_v11, %v2413_v61  ;;  %v2361_v17 = vadd.f32 %v2353_v38, %v2022_v31  ;;  %v3599_v25 = vpop.f32.mrb[35].mxu1  ;;  %v2443_v51 = vpop.xlane.xlu0 %2442  ;;  %v1926_v11 = vmul.f32 %v4677_v13, %v1907_v39  ;;  %v2461_v31 = vmul.f32 %v4688_v18, %v2440_v41 }
 0x499   : > { %v2340_v58 = vpop.xlane.xlu1 %2339  ;;  %v2356_v40 = vmul.f32 %v4681_v63, %v2337_v45  ;;  %v1927_v25 = vmul.f32 %v4677_v13, %v1910_v43  ;;  %v2462_v37 = vmul.f32 %v4688_v18, %v2443_v51 }
 0x49a   : > { %v2478_v21 = vpack.c.bf16 %v2466_v16, %v2466_v16  ;;  %v2414_v42 = vadd.f32 %v2406_v48, %v2361_v17  ;;  %v2357_v44 = vmul.f32 %v4681_v63, %v2340_v58 }
 0x49c   : > { %v2467_v23 = vadd.f32 %v2459_v20, %v2414_v42  ;;  %3639 = vmatmul.mubr.msk.bf16.vlgmr.msra.gmra.mrb[48].mxu0 %vm1377_vm3, %v2478_v21  ;;  %v2446_v50 = vpop.xlane.xlu0 %2445  ;;  %v2409_v21 = vmul.f32 %v4685_v6, %v2390_v47 }
 0x49d   : > { %3649 = vmatpush3.bf16.msra.mxu0 %v4698_v30  ;;  %3650 = vmatprep.mubr.msk.bf16.mxu0 %vm3896_vm1, %v3895_v3  ;;  %v2393_v34 = vpop.xlane.xlu1 %2392 }
 0x49e   : > { %v2479_v10 = vpack.c.bf16 %v2467_v23, %v2467_v23  ;;  %3660 = vmatprep.subr.bf16.mxu0 %v3895_v3  ;;  %v2410_v43 = vmul.f32 %v4685_v6, %v2393_v34 }
 0x4a0   : > { %3645 = vmatmul.mubr.msk.bf16.vlgmr.msra.gmra.mrb[48].mxu1 %vm1377_vm3, %v2479_v10  ;;  %v2343_v9 = vpop.xlane.xlu0 %2342 }
 0x4a1   : > { %3655 = vmatpush3.bf16.msra.mxu1 %v4706_v24  ;;  %3656 = vmatprep.mubr.msk.bf16.mxu1 %vm3896_vm1, %v3895_v3  ;;  %v1913_v53 = vpop.xlane.xlu1 %1912  ;;  %v2358_v34 = vmul.f32 %v4681_v63, %v2343_v9 }
 0x4a2   : > { %3666 = vmatprep.subr.bf16.mxu1 %v3895_v3  ;;  %v1928_v58 = vmul.f32 %v4677_v13, %v1913_v53 }
 0x4a4   : > { %v2396_v10 = vpop.xlane.xlu0 %2395 }
 0x4a5   : > { %v1916_v28 = vpop.xlane.xlu1 %1915 }
 0x4a6   : > { %v1929_v53 = vmul.f32 %v4677_v13, %v1916_v28 }
 0x4a9   : > { %v2346_v15 = vpop.xlane.xlu1 %2345 }
 0x4c7   : > { %v2069_v55 = vpop.f32.mrb[36].mxu0 }
 0x4c8   : > { %v2070_v57 = vadd.f32 %v2069_v55, %v1924_v56  ;;  %v3604_v59 = vpop.f32.mrb[37].mxu0  ;;  %v2399_v56 = vpop.xlane.xlu1 %2398 }
 0x4c9   : > { %v2072_v52 = vpop.f32.mrb[38].mxu0 }
 0x4ca   : > { %v2362_v36 = vadd.f32 %v2354_v35, %v2070_v57  ;;  %v3605_v1 = vpop.f32.mrb[39].mxu0  ;;  %v2117_v2 = vpop.f32.mrb[36].mxu1 }
 0x4cb   : > { %v2118_v5 = vadd.f32 %v2117_v2, %v1925_v62  ;;  %v3610_v29 = vpop.f32.mrb[37].mxu1  ;;  %v2449_v52 = vpop.xlane.xlu0 %2448 }
 0x4cc   : > { %v2415_v7 = vadd.f32 %v2407_v60, %v2362_v36  ;;  %v2120_v8 = vpop.f32.mrb[38].mxu1  ;;  %v2464_v13 = vmul.f32 %v4688_v18, %v2449_v52  ;;  %v2452_v28 = vpop.xlane.xlu1 %2451 }
 0x4cd   : > { %v2363_v4 = vadd.f32 %v2355_v27, %v2118_v5  ;;  %v3611_v38 = vpop.f32.mrb[39].mxu1  ;;  %v2359_v27 = vmul.f32 %v4681_v63, %v2346_v15 }
 0x4ce   : > { %v2468_v61 = vadd.f32 %v2460_v54, %v2415_v7 }
 0x4cf   : > { %v2416_v12 = vadd.f32 %v2408_v0, %v2363_v4  ;;  %v2165_v14 = vpop.f32.mrb[40].mxu0  ;;  %v2412_v0 = vmul.f32 %v4685_v6, %v2399_v56 }
 0x4d0   : > { %v2480_v48 = vpack.c.bf16 %v2468_v61, %v2468_v61  ;;  %v2166_v16 = vadd.f32 %v2165_v14, %v1926_v11  ;;  %v3616_v17 = vpop.f32.mrb[41].mxu0 }
 0x4d1   : > { %v2469_v33 = vadd.f32 %v2461_v31, %v2416_v12  ;;  %v2168_v20 = vpop.f32.mrb[42].mxu0 }
 0x4d2   : > { %v2364_v42 = vadd.f32 %v2356_v40, %v2166_v16  ;;  %v3617_v22 = vpop.f32.mrb[43].mxu0  ;;  %3651 = vmatmul.mubr.msk.bf16.vlgmr.msra.gmra.mrb[52].mxu0 %vm1377_vm3, %v2480_v48  ;;  %v2213_v23 = vpop.f32.mrb[40].mxu1 }
 0x4d3   : > { %v2481_v26 = vpack.c.bf16 %v2469_v33, %v2469_v33  ;;  %v2214_v19 = vadd.f32 %v2213_v23, %v1927_v25  ;;  %v3622_v32 = vpop.f32.mrb[41].mxu1  ;;  %3661 = vmatpush3.bf16.msra.mxu0 %v4662_v49  ;;  %3662 = vmatprep.mubr.msk.bf16.mxu0 %vm3896_vm1, %v3895_v3  ;;  %v2463_v49 = vmul.f32 %v4688_v18, %v2446_v50  ;;  %v3373_v22 = vld [vmem:[%s4898_s5] ss:$0 sm:$0xff]  ;;  %s3903_s5 = smov [#allocation5]  }
 0x4d4   : > { %v2417_v39 = vadd.f32 %v2409_v21, %v2364_v42  ;;  %v2216_v41 = vpop.f32.mrb[42].mxu1  ;;  %3672 = vmatprep.subr.bf16.mxu0 %v3895_v3  ;;  %s3129_s25 = sshll.u32 %s3903_s5, 4  ;;  %s3130_s25 = int_to_ptr.vmem [resolvable:$true] %s3129_s25 }
 0x4d5   : > { %v2365_v45 = vadd.f32 %v2357_v44, %v2214_v19  ;;  %v3623_v47 = vpop.f32.mrb[43].mxu1  ;;  %3657 = vmatmul.mubr.msk.bf16.vlgmr.msra.gmra.mrb[52].mxu1 %vm1377_vm3, %v2481_v26  ;;  %p3857_p12 = scmp.lt.s32.totalorder %s3130_s25, %s3130_s25 }
 0x4d6   : > { %v2470_v55 = vadd.f32 %v2462_v37, %v2417_v39  ;;  %3667 = vmatpush3.bf16.msra.mxu1 %v4668_v46  ;;  %3668 = vmatprep.mubr.msk.bf16.mxu1 %vm3896_vm1, %v3895_v3  ;;  %v2411_v46 = vmul.f32 %v4685_v6, %v2396_v10  ;;  %v3820_v37 = vld [vmem:[#allocation5] sm:$0xff] }
 0x4d7   : > { %v2418_v51 = vadd.f32 %v2410_v43, %v2365_v45  ;;  %v2261_v35 = vpop.f32.mrb[44].mxu0  ;;  %3678 = vmatprep.subr.bf16.mxu1 %v3895_v3 }
 0x4d8   : > { %v2482_v57 = vpack.c.bf16 %v2470_v55, %v2470_v55  ;;  %v2262_v59 = vadd.f32 %v2261_v35, %v1928_v58  ;;  %v3628_v62 = vpop.f32.mrb[45].mxu0 }
 0x4d9   : > { %v2471_v60 = vadd.f32 %v2463_v49, %v2418_v51  ;;  %v2264_v36 = vpop.f32.mrb[46].mxu0 }
 0x4da   : > { %v2366_v1 = vadd.f32 %v2358_v34, %v2262_v59  ;;  %v3629_v2 = vpop.f32.mrb[47].mxu0  ;;  %3663 = vmatmul.mubr.msk.bf16.vlgmr.msra.gmra.mrb[56].mxu0 %vm1377_vm3, %v2482_v57  ;;  %v2309_v50 = vpop.f32.mrb[44].mxu1 }
 0x4db   : > { %v2483_v5 = vpack.c.bf16 %v2471_v60, %v2471_v60  ;;  %v2310_v29 = vadd.f32 %v2309_v50, %v1929_v53  ;;  %v3634_v54 = vpop.f32.mrb[45].mxu1  ;;  %3673 = vmatpush3.bf16.msra.mxu0 %v4698_v30  ;;  %3674 = vmatprep.mubr.msk.bf16.mxu0 %vm3896_vm1, %v3895_v3  ;;  %v2465_v30 = vmul.f32 %v4688_v18, %v2452_v28  ;;  %v3821_v2 = vld [vmem:[#allocation5 + $0x8] sm:$0xff] }
 0x4dc   : > { %v2419_v7 = vadd.f32 %v2411_v46, %v2366_v1  ;;  %v2312_v8 = vpop.f32.mrb[46].mxu1  ;;  %3684 = vmatprep.subr.bf16.mxu0 %v3895_v3 }
 0x4dd   : > { %v2367_v9 = vadd.f32 %v2359_v27, %v2310_v29  ;;  %v3635_v4 = vpop.f32.mrb[47].mxu1  ;;  %3669 = vmatmul.mubr.msk.bf16.vlgmr.msra.gmra.mrb[56].mxu1 %vm1377_vm3, %v2483_v5 }
 0x4de   : > { %v2472_v63 = vadd.f32 %v2464_v13, %v2419_v7  ;;  %3679 = vmatpush3.bf16.msra.mxu1 %v4706_v24  ;;  %3680 = vmatprep.mubr.msk.bf16.mxu1 %vm3896_vm1, %v3895_v3 }
 0x4df   : > { %v2420_v38 = vadd.f32 %v2412_v0, %v2367_v9  ;;  %3692 = vmatprep.subr.bf16.mxu1 %v3895_v3 }
 0x4e0   : > { %v2484_v11 = vpack.c.bf16 %v2472_v63, %v2472_v63  ;;  %v3770_v63 = vld [vmem:[%s4074_s4] sm:$0xff]  }
 0x4e1   : > { %v2473_v61 = vadd.f32 %v2465_v30, %v2420_v38  ;;  %v3771_v30 = vld [vmem:[%s4074_s4 + $0x8] sm:$0xff]   ;;  %s4899_s4 = scalar_lea.vmem %s4853_s7, %s4039_s30 }
 0x4e2   : > { %3675 = vmatmul.mubr.msk.bf16.vlgmr.msra.gmra.mrb[60].mxu0 %vm1377_vm3, %v2484_v11 }
 0x4e3   : > { %v2485_v6 = vpack.c.bf16 %v2473_v61, %v2473_v61  ;;  %3688 = vmatprep.mubr.msk.bf16.mxu0 %vm3896_vm1, %v3895_v3  ;;  %3685 = vmatpush3.bf16.msra.mxu0 %v3770_v63 }
 0x4e4   : > { %3686 = vmatprep.subr.bf16.mxu0 %v3895_v3 }
 0x4e5   : > { %3681 = vmatmul.mubr.msk.bf16.vlgmr.msra.gmra.mrb[60].mxu1 %vm1377_vm3, %v2485_v6 }
 0x4e6   : > { %3700 = vmatprep.mubr.msk.bf16.mxu1 %vm3896_vm1, %v3895_v3 }
 0x4e7   : > { %3687 = vmatpush3.bf16.msra.mxu0 %v3771_v30 }
 0x56f   : > { %v2526_v24 = vpop.f32.mrb[48].mxu0 }
 0x570   : > { %v3640_v31 = vpop.f32.mrb[49].mxu0 }
 0x571   : > { %v2529_v18 = vpop.f32.mrb[50].mxu0 }
 0x572   : > { %v3641_v12 = vpop.f32.mrb[51].mxu0 }
 0x573   : > { %v2572_v14 = vpop.f32.mrb[48].mxu1 }
 0x574   : > { %v2842_v40 = vadd.f32 %v2572_v14, %v2526_v24  ;;  %v3646_v15 = vpop.f32.mrb[49].mxu1  ;;  %v3374_v14 = vld [vmem:[%s4899_s4] ss:$0 sm:$0xff] }
 0x575   : > { %v2575_v48 = vpop.f32.mrb[50].mxu1 }
 0x576   : > { %v3647_v16 = vpop.f32.mrb[51].mxu1 }
 0x577   : > { %v3375_v16 = vld [vmem:[%s4900_s21] ss:$0 sm:$0xff] }
 0x5a5   : > { %v2618_v17 = vpop.f32.mrb[52].mxu0 }
 0x5a6   : > { %v2844_v25 = vadd.f32 %v2842_v40, %v2618_v17  ;;  %v3652_v33 = vpop.f32.mrb[53].mxu0 }
 0x5a7   : > { %v2621_v20 = vpop.f32.mrb[54].mxu0 }
 0x5a8   : > { %v3653_v21 = vpop.f32.mrb[55].mxu0  ;;  %v2664_v42 = vpop.f32.mrb[52].mxu1 }
 0x5a9   : > { %v2846_v23 = vadd.f32 %v2844_v25, %v2664_v42  ;;  %v3658_v44 = vpop.f32.mrb[53].mxu1  ;;  %v3772_v21 = vld [vmem:[%s4084_s6] sm:$0xff]   ;;  %v3773_v42 = vld [vmem:[%s4084_s6 + $0x8] sm:$0xff]  }
 0x5aa   : > { %v2667_v10 = vpop.f32.mrb[54].mxu1  ;;  %3693 = vmatpush3.bf16.msra.mxu1 %v3772_v21  ;;  %v3376_v44 = vld [vmem:[%s4901_s17] ss:$0 sm:$0xff] }
 0x5ab   : > { %v2855_v26 = vadd.f32 %v3373_v22, %v2846_v23  ;;  %v3659_v19 = vpop.f32.mrb[55].mxu1  ;;  %3694 = vmatprep.subr.bf16.mxu1 %v3895_v3  ;;  %v3775_v23 = vld [vmem:[%s4084_s6 + $0x18] sm:$0xff]  }
 0x5ad   : > { %v2707_v32 = vpop.f32.mrb[56].mxu0  ;;  %v2857_v39 = vadd.f32 %v3820_v37, %v2855_v26 }
 0x5ae   : > { %v3664_v41 = vpop.f32.mrb[57].mxu0  ;;  %3695 = vmatpush3.bf16.msra.mxu1 %v3773_v42 }
 0x5af   : > { %v2710_v43 = vpop.f32.mrb[58].mxu0  ;;  %v2859_v45 = vsel %vm785_vm2, %v2857_v39, 0.0  ;;  %3696 = vmatprep.subr.bf16.mxu1 %v3895_v3 }
 0x5b0   : > { %v3665_v47 = vpop.f32.mrb[59].mxu0  ;;  %v2750_v58 = vpop.f32.mrb[56].mxu1  ;;  %2860 = vadd.xlane.f32.xlu0 %v2859_v45 }
 0x5b1   : > { %v2843_v56 = vadd.f32 %v2750_v58, %v2707_v32  ;;  %v3670_v55 = vpop.f32.mrb[57].mxu1 }
 0x5b2   : > { %v2753_v49 = vpop.f32.mrb[58].mxu1 }
 0x5b3   : > { %v3671_v51 = vpop.f32.mrb[59].mxu1 }
 0x5b5   : > { %v2793_v35 = vpop.f32.mrb[60].mxu0 }
 0x5b6   : > { %v2845_v34 = vadd.f32 %v2843_v56, %v2793_v35  ;;  %v3676_v57 = vpop.f32.mrb[61].mxu0 }
 0x5b7   : > { %v2796_v59 = vpop.f32.mrb[62].mxu0 }
 0x5b8   : > { %v3677_v62 = vpop.f32.mrb[63].mxu0  ;;  %v2836_v53 = vpop.f32.mrb[60].mxu1 }
 0x5b9   : > { %v2847_v52 = vadd.f32 %v2845_v34, %v2836_v53  ;;  %v3682_v60 = vpop.f32.mrb[61].mxu1 }
 0x5ba   : > { %v2839_v36 = vpop.f32.mrb[62].mxu1 }
 0x5bb   : > { %v2856_v46 = vadd.f32 %v3373_v22, %v2847_v52  ;;  %v3683_v1 = vpop.f32.mrb[63].mxu1  ;;  %v3774_v22 = vld [vmem:[%s4084_s6 + $0x10] sm:$0xff]  }
 0x5bc   : > { %3697 = vmatpush3.bf16.msra.mxu1 %v3774_v22 }
 0x5bd   : > { %v2858_v50 = vadd.f32 %v3821_v2, %v2856_v46  ;;  %3698 = vmatprep.subr.bf16.mxu1 %v3895_v3  ;;  %v3380_v46 = vld [vmem:[%s704_s26] ss:$0 sm:$0xff]  ;;  %s4902_s26 = sld [smem:[#allocation9_spill]] }
 0x5bf   : > { %v2862_v27 = vsel %vm785_vm2, %v2858_v50, 0.0 }
 0x5c0   : > { %2863 = vadd.xlane.f32.xlu1 %v2862_v27  ;;  %3699 = vmatpush3.bf16.msra.mxu1 %v3775_v23 }
 0x5c3   : > { %p3718_p4 = scmp.eq.s32.totalorder %s4902_s26, 1 }
 0x63d   : > { %v2861_v5 = vpop.xlane.xlu0 %2860 }
 0x63e   : > { %v2866_v29 = vmul.f32 0.03125, %v2861_v5 }
 0x640   : > { %v2868_v54 = vsub.f32 %v2857_v39, %v2866_v29 }
 0x642   : > { %v2870_v13 = vmul.f32 %v2868_v54, %v2868_v54 }
 0x644   : > { %v2872_v28 = vsel %vm785_vm2, %v2870_v13, 0.0 }
 0x645   : > { %2873 = vadd.xlane.f32.xlu0 %v2872_v28 }
 0x64d   : > { %v2864_v7 = vpop.xlane.xlu1 %2863 }
 0x64e   : > { %v2867_v8 = vmul.f32 0.03125, %v2864_v7 }
 0x650   : > { %v2869_v0 = vsub.f32 %v2858_v50, %v2867_v8 }
 0x652   : > { %v2871_v9 = vmul.f32 %v2869_v0, %v2869_v0 }
 0x654   : > { %v2875_v4 = vsel %vm785_vm2, %v2871_v9, 0.0 }
 0x655   : > { %2876 = vadd.xlane.f32.xlu1 %v2875_v4 }
 0x6d2   : > { %v2874_v38 = vpop.xlane.xlu0 %2873 }
 0x6d3   : > { %v2878_v11 = vmul.f32 0.03125, %v2874_v38 }
 0x6d5   : > { %v2880_v61 = vadd.f32 1e-12, %v2878_v11 }
 0x6d7   : > { %3808 = vrsqrt.f32 %v2880_v61 }
 0x6e1   : > { %v3809_v18 = vpop.eup %3808 }
 0x6e2   : > { %v2877_v6 = vpop.xlane.xlu1 %2876  ;;  %v2884_v12 = vmul.f32 %v3809_v18, %v2868_v54 }
 0x6e3   : > { %v2879_v24 = vmul.f32 0.03125, %v2877_v6 }
 0x6e4   : > { %v2893_v15 = vmul.f32 %v3374_v14, %v2884_v12 }
 0x6e5   : > { %v2881_v31 = vadd.f32 1e-12, %v2879_v24 }
 0x6e6   : > { %v2902_v25 = vadd.f32 %v3375_v16, %v2893_v15 }
 0x6e7   : > { %3810 = vrsqrt.f32 %v2881_v31 }
 0x6f1   : > { %v3811_v40 = vpop.eup %3810 }
 0x6f2   : > { %v2885_v48 = vmul.f32 %v3811_v40, %v2869_v0 }
 0x6f4   : > { %v2894_v17 = vmul.f32 %v3374_v14, %v2885_v48  ;;  %v3386_v48 = vld [vmem:[%s707_s3] ss:$0 sm:$0xff]  ;;  %s3850_s3 = scalar_lea.vmem %s3130_s25, 256 }
 0x6f5   : > { %p3851_p6 = scmp.ne.s32.totalorder %s3130_s25, %s3850_s3  ;;  %p3858_p13 = scmp.lt.s32.totalorder %s3850_s3, %s3850_s3 }
 0x6f6   : > { %v2903_v33 = vadd.f32 %v3375_v16, %v2894_v17 }
 0x6f7   : > { %p3852_p10 = pnand %p3851_p6, %p3718_p4  ;;  %p3859_p0 = por %p3858_p13, %p3857_p12 }
 0x6f8   : > { %v2904_v20 = vpack.c.bf16 %v2903_v33, %v2902_v25 }
 0x6f9   : > { %p3853_p11 = pneg %p3852_p10 }
 0x6fa   : > { %3689 = vmatmul.mubr.msk.bf16.vlgmr.msra.gmra.mrb[64].mxu0 %vm785_vm2, %v2904_v20 }
 0x6fb   : > { %p3860_p1 = pnand %p3859_p0, %p3853_p11 }
 0x7cd   : > { %v2965_v10 = vpop.f32.mrb[64].mxu0 }
 0x7ce   : > { %v2966_v26 = vadd.f32 %v3376_v44, %v2965_v10  ;;  %v3690_v19 = vpop.f32.mrb[65].mxu0 }
 0x7cf   : > { %v2968_v32 = vpop.f32.mrb[66].mxu0 }
 0x7d0   : > { %v2972_v37 = vmul.f32 %v2966_v26, %v2966_v26  ;;  %v2969_v39 = vadd.f32 %v3376_v44, %v2968_v32  ;;  %v3691_v41 = vpop.f32.mrb[67].mxu0 }
 0x7d2   : > { %v2974_v43 = vmul.f32 %v2972_v37, %v2966_v26  ;;  %v2973_v45 = vmul.f32 %v2969_v39, %v2969_v39 }
 0x7d4   : > { %v2976_v47 = vmul.f32 0.044715, %v2974_v43  ;;  %v2975_v58 = vmul.f32 %v2973_v45, %v2969_v39 }
 0x7d6   : > { %v2978_v56 = vadd.f32 %v2976_v47, %v2966_v26  ;;  %v2977_v55 = vmul.f32 0.044715, %v2975_v58 }
 0x7d8   : > { %v2980_v3 = vmul.f32 0.7978846, %v2978_v56  ;;  %v2979_v49 = vadd.f32 %v2977_v55, %v2969_v39 }
 0x7da   : > { %3812 = vtanh.f32 %v2980_v3  ;;  %v2981_v51 = vmul.f32 0.7978846, %v2979_v49 }
 0x7dc   : > { %3814 = vtanh.f32 %v2981_v51 }
 0x7e4   : > { %v3813_v35 = vpop.eup %3812 }
 0x7e5   : > { %v2984_v34 = vadd.f32 1.0, %v3813_v35 }
 0x7e6   : > { %v3815_v57 = vpop.eup %3814 }
 0x7e7   : > { %v2986_v59 = vmul.f32 0.5, %v2984_v34  ;;  %v2985_v62 = vadd.f32 1.0, %v3815_v57 }
 0x7e9   : > { %v2987_v53 = vmul.f32 0.5, %v2985_v62  ;;  %v2988_v52 = vmul.f32 %v2986_v59, %v2966_v26 }
 0x7eb   : > { %v2989_v60 = vmul.f32 %v2987_v53, %v2969_v39 }
 0x7ed   : > { %v2990_v36 = vpack.c.bf16 %v2989_v60, %v2988_v52 }
 0x7ef   : > { %3701 = vmatmul.mubr.msk.bf16.vlgmr.msra.gmra.mrb[64].mxu1 %vm3030_vm13, %v2990_v36 }
 0x8c2   : > { %v3068_v1 = vpop.f32.mrb[64].mxu1 }
 0x8c3   : > { %v3069_v2 = vadd.f32 %v3380_v46, %v3068_v1  ;;  %v3702_v50 = vpop.f32.mrb[65].mxu1 }
 0x8c4   : > { %v3071_v27 = vpop.f32.mrb[66].mxu1 }
 0x8c5   : > { %v3072_v5 = vadd.f32 %v3380_v46, %v3071_v27  ;;  %v3703_v29 = vpop.f32.mrb[67].mxu1  ;;  %v3075_v54 = vadd.f32 %v3069_v2, %v2902_v25  ;;  %v3387_v25 = vld [vmem:[%s710_s24] ss:$0 sm:$0xff] }
 0x8c7   : > { %v3076_v13 = vadd.f32 %v3072_v5, %v2903_v33  ;;  %v3077_v28 = vsel %vm785_vm2, %v3075_v54, 0.0 }
 0x8c8   : > { %3078 = vadd.xlane.f32.xlu0 %v3077_v28 }
 0x8c9   : > { %v3080_v7 = vsel %vm785_vm2, %v3076_v13, 0.0 }
 0x8ca   : > { %3081 = vadd.xlane.f32.xlu1 %v3080_v7 }
 0x955   : > { %v3079_v8 = vpop.xlane.xlu0 %3078 }
 0x956   : > { %v3083_v0 = vmul.f32 0.03125, %v3079_v8 }
 0x957   : > { %v3082_v9 = vpop.xlane.xlu1 %3081 }
 0x958   : > { %v3085_v4 = vsub.f32 %v3075_v54, %v3083_v0  ;;  %v3084_v63 = vmul.f32 0.03125, %v3082_v9 }
 0x95a   : > { %v3086_v30 = vsub.f32 %v3076_v13, %v3084_v63  ;;  %v3087_v38 = vmul.f32 %v3085_v4, %v3085_v4 }
 0x95c   : > { %v3089_v11 = vsel %vm785_vm2, %v3087_v38, 0.0  ;;  %v3088_v61 = vmul.f32 %v3086_v30, %v3086_v30 }
 0x95d   : > { %3090 = vadd.xlane.f32.xlu0 %v3089_v11 }
 0x95e   : > { %v3092_v6 = vsel %vm785_vm2, %v3088_v61, 0.0 }
 0x95f   : > { %3093 = vadd.xlane.f32.xlu1 %v3092_v6 }
 0x9ea   : > { %v3091_v24 = vpop.xlane.xlu0 %3090 }
 0x9eb   : > { %v3095_v31 = vmul.f32 0.03125, %v3091_v24 }
 0x9ec   : > { %v3094_v18 = vpop.xlane.xlu1 %3093 }
 0x9ed   : > { %v3097_v12 = vadd.f32 1e-12, %v3095_v31  ;;  %v3096_v14 = vmul.f32 0.03125, %v3094_v18 }
 0x9ef   : > { %3816 = vrsqrt.f32 %v3097_v12  ;;  %v3098_v40 = vadd.f32 1e-12, %v3096_v14 }
 0x9f1   : > { %3818 = vrsqrt.f32 %v3098_v40 }
 0x9f9   : > { %v3817_v15 = vpop.eup %3816 }
 0x9fa   : > { %v3101_v16 = vmul.f32 %v3817_v15, %v3085_v4 }
 0x9fb   : > { %v3819_v17 = vpop.eup %3818 }
 0x9fc   : > { %v3110_v33 = vmul.f32 %v3386_v48, %v3101_v16  ;;  %v3102_v20 = vmul.f32 %v3819_v17, %v3086_v30 }
 0x9fe   : > { %v3111_v21 = vmul.f32 %v3386_v48, %v3102_v20  ;;  %v3119_v42 = vadd.f32 %v3387_v25, %v3110_v33 }
 0xa00   : > { %v3120_v22 = vadd.f32 %v3387_v25, %v3111_v21  ;;  %3121 = vst.msk [vmem:[#allocation5] sm:$0xff] %vm785_vm2, %v3119_v42 }
 0xa02   : > { %3122 = vst.msk [vmem:[#allocation5 + $0x8] sm:$0xff] %vm785_vm2, %v3120_v22 }
 0xa03   : > { %3863 = shalt.err (!%p3860_p1)
}
 0xa04   : > { %s4903_s18 = sld [smem:[#allocation17_spill]] }
 0xa0a   : > { %s3864_s4 = scalar_lea.hbm %s4903_s18, 256 }
 0xa0b   : > { %p3865_p5 = scmp.ne.s32.totalorder %s4903_s18, %s3864_s4  ;;  %p3870_p8 = scmp.lt.u32.totalorder %s3864_s4, %s4903_s18 }
 0xa0d   : > { %p3866_p7 = pnand %p3865_p5, %p3718_p4 }
 0xa0f   : > { %p3867_p9 = pneg %p3866_p7 }
 0xa11   : > { %p3872_p2 = pnand %p3870_p8, %p3867_p9 }
 0xa13   : > { %3875 = shalt.err (!%p3872_p2)
}
 0xa14   : > { %s3904_s22 = smov 128   ;;  %s3905_s17 = smov 8  }
 0xa15   : > { %3709 = dma.vmem_to_hbm [thread:$0]  (%p3718_p4), %s3130_s25, 256, %s4903_s18, [#allocation4], %s3904_s22, %s3904_s22, %s3905_s17  }
 0xa16   : > { %3885 = dma.done.wait (%p3718_p4), [#allocation4], 256  }
 0xa17   : > { %3887 = vsyncadd (%p3718_p4), [#allocation4], 4294967040 }
 0xa18 PF: > { %s4904_s28 = sld [smem:[#allocation8_spill]] }
 0xa1e   : > { %s28_s21 = sadd.s32 1, %s4904_s28  }
 0xa1f   : > { %p25_p3 = scmp.ge.s32.totalorder %s28_s21, 4  }
 0xa21   :  { %27 = sbr.rel (!%p25_p3) target bundleno = 11 (0xb), region = 156 }
 0xa28   :  { %3145 = vsyncpa [#allocation3], 1 }
 0xa29   :  { %3147 = vsyncpa [#allocation3 + $0x1], 1 }
 0xa2a   :  { %3148 = vsyncpa [#allocation4], 1 }
 0xa2b   :  { %3150 = vsyncpa [#allocation4 + $0x1], 1 }

</bundles_post_ra>
